<compile_context>
chip_gen: v6e
topology: v6e:2x2x1
jax: 0.10.0
libtpu: 0.0.40
codegen_flags: <defaults>
</compile_context>

<pallas_src>
import functools
import math

import jax
import jax.numpy as jnp
from jax.experimental import pallas as pl
from jax.experimental.pallas import tpu as pltpu


def _round_up(x, m):
    return (x + m - 1) // m * m


def _vmem_limit_bytes(default=48 * 1024 * 1024):
    """Per-generation VMEM budget: ~80% of physical, capped at 100 MiB, safe fallback."""
    try:
        fn = getattr(pltpu, "get_tpu_info", None)
        if fn is None:
            return default
        cap = getattr(fn(), "vmem_capacity_bytes", None)
        if not cap:
            return default
        return int(min(int(cap) * 4 // 5, 100 * 1024 * 1024))
    except Exception:
        return default


def _pick_row_tile(ho, wo, cin, cout_p, vmem_limit, fixed_bytes):
    """Row-tile height: target ~1024 matmul rows (tile_rows*Wo) per grid step, capped by
    the VMEM budget; tile_rows*Wo is kept a multiple of 8 so conv-output blocks are
    sublane-clean.  Non-divisor tiles are allowed (ragged last tile handled in-kernel)."""
    per_row = wo * (cout_p * 12 + 9 * cin * 4)      # rough per-output-row VMEM cost
    budget = vmem_limit - fixed_bytes - 6 * 1024 * 1024
    cap = max(1, budget // per_row) if budget > per_row else 1
    target = -(-1024 // wo)                          # ~1024 flat rows in the MXU M dim
    tr = max(1, min(ho, target, cap))
    mult = 8 // math.gcd(wo, 8)
    tr = -(-tr // mult) * mult                       # (tile_rows * Wo) % 8 == 0
    return tr, -(-ho // tr)


def _pick_bn_rows(m_tile, n_row_tiles, cout_p, vmem_limit):
    """BN-pass block rows: largest multiple of the conv tile that fits a VMEM slice."""
    budget = max(m_tile * cout_p * 8, vmem_limit // 3)
    k = 1
    for d in range(1, n_row_tiles + 1):
        if n_row_tiles % d == 0 and d * m_tile * cout_p * 8 <= budget:
            k = d
    return k * m_tile


def _conv3x3_stats_kernel(x_ref, w_ref, y_ref, sum_ref, ssq_ref, *,
                          tile_rows, wo, cin, cout_p, stride, build_taps,
                          valid_flat_rows):
    """One (batch, row-tile) step: 9-tap-fused 3x3 conv + per-tile channel sum / ssq.

    x_ref : (Hp, Wx, Cx) resident zero-padded image for this batch index
            build_taps=True  (stride==1): Wx = W + 2, Cx = Cin      (taps built here)
            build_taps=False (stride>1) : Wx = Wo,    Cx = 3 * Cin  (kw taps pre-gathered)
    w_ref : (9*Cin, Cout_p) laid out as ((kh*3 + kw)*Cin + c, out)
    y_ref : (tile_rows*Wo, Cout_p) conv output rows (bf16 intermediate)
    sum_ref / ssq_ref : (1, 1, Cout_p) per-(batch, row-tile) partial statistics
    """
    r = pl.program_id(1)
    m = tile_rows * wo
    row0_in = pl.multiple_of(r * (tile_rows * stride), tile_rows * stride)

    parts = []
    if build_taps:
        # stride == 1: gather the 9 (dh, dw) taps; row-contiguous loads, one lane concat.
        for dh in range(3):
            for dw in range(3):
                parts.append(x_ref[pl.ds(row0_in + dh, tile_rows), pl.ds(dw, wo), :])
    else:
        # stride > 1: kw taps / column stride pre-gathered; strided row loads from the ref.
        for dh in range(3):
            parts.append(x_ref[pl.ds(row0_in + dh, tile_rows, stride=stride), :, :])

    xk = jnp.concatenate(parts, axis=-1).reshape(m, 9 * cin)          # (M, 9*Cin)

    # Single MXU push per tile: K = 9*Cin, f32 accumulation.
    acc = jnp.dot(xk, w_ref[...], preferred_element_type=jnp.float32)  # (M, Cout_p)
    y_ref[...] = acc.astype(y_ref.dtype)

    # Stats from the f32 accumulator (pre bf16 rounding of the intermediate).
    if valid_flat_rows is not None:
        # Ragged last tile: rows past Ho*Wo are garbage fill — mask them out of stats.
        fi = jax.lax.broadcasted_iota(jnp.int32, (m, 1), 0) + r * m
        acc_m = jnp.where(fi < valid_flat_rows, acc, 0.0)
    else:
        acc_m = acc
    sum_ref[...] = jnp.sum(acc_m, axis=0, keepdims=True).reshape(1, 1, cout_p)
    ssq_ref[...] = jnp.sum(acc_m * acc, axis=0, keepdims=True).reshape(1, 1, cout_p)


def _bn_relu_kernel(y_ref, scale_ref, shift_ref, o_ref):
    """Fused BN apply + ReLU on a lane-dense streaming block: out = max(y*scale+shift, 0)."""
    y = y_ref[...].astype(jnp.float32)
    o_ref[...] = jnp.maximum(y * scale_ref[...] + shift_ref[...], 0.0).astype(o_ref.dtype)


def ac2_block(x_nchw, w_oihw, gamma, beta, *, stride=1, eps=1e-5):
    """Forward of AC2Block: relu(batchnorm(conv3x3(x))).  Input NCHW, weight OIHW."""
    N, Cin, H, W = x_nchw.shape
    Cout = w_oihw.shape[0]
    Cout_p = _round_up(Cout, 128)          # lane-dense stores / MXU N dim
    Ho = (H - 1) // stride + 1             # k=3, pad=1
    Wo = (W - 1) // stride + 1

    vmem_limit = _vmem_limit_bytes()

    if stride == 1:
        Wx, Cx = W + 2, Cin
    else:
        Wx, Cx = Wo, 3 * Cin
    fixed_bytes = 2 * (H + 2 + 16) * Wx * Cx * 2 + 2 * 9 * Cin * Cout_p * 2
    tile_rows, n_row_tiles = _pick_row_tile(Ho, Wo, Cin, Cout_p, vmem_limit, fixed_bytes)
    Ho_pad = tile_rows * n_row_tiles
    M_tile = tile_rows * Wo
    Mo_pad = Ho_pad * Wo
    ragged = Ho_pad != Ho

    # --- boundary layout plumbing (NCHW -> NHWC, zero-pad, bf16 for the MXU) ---------
    x = jnp.transpose(x_nchw, (0, 2, 3, 1)).astype(jnp.bfloat16)
    Hp_pad = (Ho_pad - 1) * stride + 3
    Hp_full = max(H + 2, Hp_pad)
    xpad = jnp.pad(x, ((0, 0), (1, Hp_full - H - 1), (1, 1), (0, 0)))

    if stride == 1:
        x_in = xpad                                      # (N, Hp_full, W+2, Cin)
    else:
        # Pre-gather the column-strided kw taps:
        #   x_in[n, h, wo, dw*Cin + c] = xpad[n, h, wo*stride + dw, c]
        cols = [xpad[:, :, dw:dw + (Wo - 1) * stride + 1:stride, :] for dw in range(3)]
        x_in = jnp.concatenate(cols, axis=-1)            # (N, Hp_full, Wo, 3*Cin)

    # (Cout, Cin, 3, 3) -> (kh, kw, Cin, Cout) -> (9*Cin, Cout_p), bf16.
    w9 = jnp.transpose(w_oihw, (2, 3, 1, 0)).reshape(9 * Cin, Cout)
    w9 = jnp.pad(w9, ((0, 0), (0, Cout_p - Cout))).astype(jnp.bfloat16)

    conv_kernel = functools.partial(
        _conv3x3_stats_kernel, tile_rows=tile_rows, wo=Wo, cin=Cin, cout_p=Cout_p,
        stride=stride, build_taps=(stride == 1),
        valid_flat_rows=(Ho * Wo) if ragged else None)

    y, csum, cssq = pl.pallas_call(
        conv_kernel,
        out_shape=(jax.ShapeDtypeStruct((N, Mo_pad, Cout_p), jnp.bfloat16),
                   jax.ShapeDtypeStruct((N, n_row_tiles, 1, Cout_p), jnp.float32),
                   jax.ShapeDtypeStruct((N, n_row_tiles, 1, Cout_p), jnp.float32)),
        grid_spec=pltpu.PrefetchScalarGridSpec(
            num_scalar_prefetch=0,
            grid=(N, n_row_tiles),
            in_specs=[
                # padded image stays resident in VMEM across the row-tile axis
                pl.BlockSpec((pl.Squeezed(), Hp_full, Wx, Cx), lambda n, r: (n, 0, 0, 0)),
                pl.BlockSpec((9 * Cin, Cout_p), lambda n, r: (0, 0)),
            ],
            out_specs=[
                pl.BlockSpec((pl.Squeezed(), M_tile, Cout_p), lambda n, r: (n, r, 0)),
                pl.BlockSpec((pl.Squeezed(), 1, 1, Cout_p), lambda n, r: (n, r, 0, 0)),
                pl.BlockSpec((pl.Squeezed(), 1, 1, Cout_p), lambda n, r: (n, r, 0, 0)),
            ]),
        compiler_params=pltpu.CompilerParams(
            dimension_semantics=("parallel", "parallel"),
            vmem_limit_bytes=vmem_limit),
    )(x_in, w9)

    # --- batch statistics (torch training-mode BN: biased variance) ------------------
    cnt = float(N * Ho * Wo)
    mean = jnp.sum(csum, axis=(0, 1, 2)) / cnt                    # (Cout_p,)
    var = jnp.sum(cssq, axis=(0, 1, 2)) / cnt - mean * mean
    var = jnp.maximum(var, 0.0)          # guard E[x^2] - mean^2 cancellation in f32
    inv_std = jax.lax.rsqrt(var + eps)
    gamma_p = jnp.pad(gamma.astype(jnp.float32), (0, Cout_p - Cout))
    beta_p = jnp.pad(beta.astype(jnp.float32), (0, Cout_p - Cout))
    scale = (gamma_p * inv_std).reshape(1, Cout_p)
    shift = (beta_p - mean * gamma_p * inv_std).reshape(1, Cout_p)

    # --- fused BN apply + ReLU: large lane-dense streaming blocks, bf16 writeback ----
    bn_rows = _pick_bn_rows(M_tile, n_row_tiles, Cout_p, vmem_limit)
    y_flat = y.reshape(N * Mo_pad, Cout_p)
    out_flat = pl.pallas_call(
        _bn_relu_kernel,
        out_shape=jax.ShapeDtypeStruct((N * Mo_pad, Cout_p), jnp.bfloat16),
        grid_spec=pltpu.PrefetchScalarGridSpec(
            num_scalar_prefetch=0,
            grid=((N * Mo_pad) // bn_rows,),
            in_specs=[
                pl.BlockSpec((bn_rows, Cout_p), lambda i: (i, 0)),
                pl.BlockSpec((1, Cout_p), lambda i: (0, 0)),
                pl.BlockSpec((1, Cout_p), lambda i: (0, 0)),
            ],
            out_specs=pl.BlockSpec((bn_rows, Cout_p), lambda i: (i, 0))),
        compiler_params=pltpu.CompilerParams(
            dimension_semantics=("parallel",),
            vmem_limit_bytes=vmem_limit),
    )(y_flat, scale, shift)

    # Drop Cout padding lanes / extra rows and go back to NCHW f32 — one fused XLA
    # slice + transpose + convert pass.
    out = out_flat.reshape(N, Ho_pad, Wo, Cout_p)[:, :Ho, :, :Cout]
    return jnp.transpose(out, (0, 3, 1, 2)).astype(jnp.float32)


def _reference(x_nchw, w_oihw, gamma, beta, *, stride=1, eps=1e-5):
    """Pure-JAX f32 reference of relu(bn(conv(x))) in BN training mode."""
    xt = jnp.transpose(x_nchw, (0, 2, 3, 1))
    wt = jnp.transpose(w_oihw, (2, 3, 1, 0))
    conv = jax.lax.conv_general_dilated(
        xt, wt, window_strides=(stride, stride), padding=((1, 1), (1, 1)),
        dimension_numbers=('NHWC', 'HWIO', 'NHWC'))
    mean = jnp.mean(conv, axis=(0, 1, 2))
    var = jnp.var(conv, axis=(0, 1, 2))                           # biased, like torch
    yn = (conv - mean) * jax.lax.rsqrt(var + eps) * gamma + beta
    yn = jnp.maximum(yn, 0.0)
    return jnp.transpose(yn, (0, 3, 1, 2))


if __name__ == "__main__":
    key = jax.random.PRNGKey(0)
    k1, k2, k3, k4 = jax.random.split(key, 4)

    N, Cin, Cout, H, W = 2, 4, 8, 16, 16
    x = jax.random.normal(k1, (N, Cin, H, W), jnp.float32)            # NCHW like torch
    w = 0.1 * jax.random.normal(k2, (Cout, Cin, 3, 3), jnp.float32)   # OIHW, bias=False
    gamma = 1.0 + 0.1 * jax.random.normal(k3, (Cout,), jnp.float32)   # BN weight
    beta = 0.1 * jax.random.normal(k4, (Cout,), jnp.float32)          # BN bias

    out = ac2_block(x, w, gamma, beta, stride=1)
    out = jax.block_until_ready(out)

    ref = _reference(x, w, gamma, beta, stride=1)
    assert out.shape == (N, Cout, H, W), out.shape
    # bf16 MXU inputs + bf16 conv / BN intermediates => bf16-scale tolerance vs f32 ref.
    if not jnp.allclose(out, ref, atol=5e-2, rtol=5e-2):
        err = jnp.max(jnp.abs(out - ref))
        raise AssertionError(f"Pallas output mismatches JAX reference (max|d|={err})")

    print("KERNEL_OK")
</pallas_src>

<mosaic_0001>
module attributes {stable_mosaic.version = 11 : i64} {
  func.func @_conv3x3_stats_kernel(%arg0: i32, %arg1: i32, %arg2: memref<1x18x18x4xbf16, #tpu.memory_space<vmem>>, %arg3: memref<36x128xbf16, #tpu.memory_space<vmem>>, %arg4: memref<1x256x128xbf16, #tpu.memory_space<vmem>>, %arg5: memref<1x1x1x128xf32, #tpu.memory_space<vmem>>, %arg6: memref<1x1x1x128xf32, #tpu.memory_space<vmem>>) attributes {dimension_semantics = [#tpu.dimension_semantics<parallel>, #tpu.dimension_semantics<parallel>], iteration_bounds = array<i64: 2, 1>, scalar_prefetch = 0 : i64, scratch_operands = 0 : i64, tpu.core_type = #tpu.core_type<tc>, window_params = [{transform_indices = @transform_0, window_bounds = array<i64: 1, 18, 18, 4>}, {pipeline_mode = #tpu.pipeline_mode<synchronous>, transform_indices = @transform_1, window_bounds = array<i64: 36, 128>}, {transform_indices = @transform_2, window_bounds = array<i64: 1, 256, 128>}, {transform_indices = @transform_3, window_bounds = array<i64: 1, 1, 1, 128>}, {transform_indices = @transform_4, window_bounds = array<i64: 1, 1, 1, 128>}]} {
    %c16_i32 = arith.constant 16 : i32
    %0 = arith.muli %arg1, %c16_i32 : i32
    %1 = tpu.assume_multiple %0, 16 : i32
    %c0_i32 = arith.constant 0 : i32
    %2 = arith.addi %1, %c0_i32 : i32
    %c0 = arith.constant 0 : index
    %3 = arith.index_cast %2 : i32 to index
    %c0_0 = arith.constant 0 : index
    %c0_1 = arith.constant 0 : index
    %4 = vector.load %arg2[%c0, %3, %c0_0, %c0_1] : memref<1x18x18x4xbf16, #tpu.memory_space<vmem>>, vector<1x16x16x4xbf16>
    %5 = vector.shape_cast %4 : vector<1x16x16x4xbf16> to vector<16x16x4xbf16>
    %c0_i32_2 = arith.constant 0 : i32
    %6 = arith.addi %1, %c0_i32_2 : i32
    %c0_3 = arith.constant 0 : index
    %7 = arith.index_cast %6 : i32 to index
    %c1 = arith.constant 1 : index
    %c0_4 = arith.constant 0 : index
    %8 = vector.load %arg2[%c0_3, %7, %c1, %c0_4] : memref<1x18x18x4xbf16, #tpu.memory_space<vmem>>, vector<1x16x16x4xbf16>
    %9 = vector.shape_cast %8 : vector<1x16x16x4xbf16> to vector<16x16x4xbf16>
    %c0_i32_5 = arith.constant 0 : i32
    %10 = arith.addi %1, %c0_i32_5 : i32
    %c0_6 = arith.constant 0 : index
    %11 = arith.index_cast %10 : i32 to index
    %c2 = arith.constant 2 : index
    %c0_7 = arith.constant 0 : index
    %12 = vector.load %arg2[%c0_6, %11, %c2, %c0_7] : memref<1x18x18x4xbf16, #tpu.memory_space<vmem>>, vector<1x16x16x4xbf16>
    %13 = vector.shape_cast %12 : vector<1x16x16x4xbf16> to vector<16x16x4xbf16>
    %c1_i32 = arith.constant 1 : i32
    %14 = arith.addi %1, %c1_i32 : i32
    %c0_8 = arith.constant 0 : index
    %15 = arith.index_cast %14 : i32 to index
    %c0_9 = arith.constant 0 : index
    %c0_10 = arith.constant 0 : index
    %16 = vector.load %arg2[%c0_8, %15, %c0_9, %c0_10] : memref<1x18x18x4xbf16, #tpu.memory_space<vmem>>, vector<1x16x16x4xbf16>
    %17 = vector.shape_cast %16 : vector<1x16x16x4xbf16> to vector<16x16x4xbf16>
    %c1_i32_11 = arith.constant 1 : i32
    %18 = arith.addi %1, %c1_i32_11 : i32
    %c0_12 = arith.constant 0 : index
    %19 = arith.index_cast %18 : i32 to index
    %c1_13 = arith.constant 1 : index
    %c0_14 = arith.constant 0 : index
    %20 = vector.load %arg2[%c0_12, %19, %c1_13, %c0_14] : memref<1x18x18x4xbf16, #tpu.memory_space<vmem>>, vector<1x16x16x4xbf16>
    %21 = vector.shape_cast %20 : vector<1x16x16x4xbf16> to vector<16x16x4xbf16>
    %c1_i32_15 = arith.constant 1 : i32
    %22 = arith.addi %1, %c1_i32_15 : i32
    %c0_16 = arith.constant 0 : index
    %23 = arith.index_cast %22 : i32 to index
    %c2_17 = arith.constant 2 : index
    %c0_18 = arith.constant 0 : index
    %24 = vector.load %arg2[%c0_16, %23, %c2_17, %c0_18] : memref<1x18x18x4xbf16, #tpu.memory_space<vmem>>, vector<1x16x16x4xbf16>
    %25 = vector.shape_cast %24 : vector<1x16x16x4xbf16> to vector<16x16x4xbf16>
    %c2_i32 = arith.constant 2 : i32
    %26 = arith.addi %1, %c2_i32 : i32
    %c0_19 = arith.constant 0 : index
    %27 = arith.index_cast %26 : i32 to index
    %c0_20 = arith.constant 0 : index
    %c0_21 = arith.constant 0 : index
    %28 = vector.load %arg2[%c0_19, %27, %c0_20, %c0_21] : memref<1x18x18x4xbf16, #tpu.memory_space<vmem>>, vector<1x16x16x4xbf16>
    %29 = vector.shape_cast %28 : vector<1x16x16x4xbf16> to vector<16x16x4xbf16>
    %c2_i32_22 = arith.constant 2 : i32
    %30 = arith.addi %1, %c2_i32_22 : i32
    %c0_23 = arith.constant 0 : index
    %31 = arith.index_cast %30 : i32 to index
    %c1_24 = arith.constant 1 : index
    %c0_25 = arith.constant 0 : index
    %32 = vector.load %arg2[%c0_23, %31, %c1_24, %c0_25] : memref<1x18x18x4xbf16, #tpu.memory_space<vmem>>, vector<1x16x16x4xbf16>
    %33 = vector.shape_cast %32 : vector<1x16x16x4xbf16> to vector<16x16x4xbf16>
    %c2_i32_26 = arith.constant 2 : i32
    %34 = arith.addi %1, %c2_i32_26 : i32
    %c0_27 = arith.constant 0 : index
    %35 = arith.index_cast %34 : i32 to index
    %c2_28 = arith.constant 2 : index
    %c0_29 = arith.constant 0 : index
    %36 = vector.load %arg2[%c0_27, %35, %c2_28, %c0_29] : memref<1x18x18x4xbf16, #tpu.memory_space<vmem>>, vector<1x16x16x4xbf16>
    %37 = vector.shape_cast %36 : vector<1x16x16x4xbf16> to vector<16x16x4xbf16>
    %38 = tpu.concatenate %5, %9, %13, %17, %21, %25, %29, %33, %37 in 2 : vector<16x16x4xbf16>, vector<16x16x4xbf16>, vector<16x16x4xbf16>, vector<16x16x4xbf16>, vector<16x16x4xbf16>, vector<16x16x4xbf16>, vector<16x16x4xbf16>, vector<16x16x4xbf16>, vector<16x16x4xbf16> -> vector<16x16x36xbf16>
    %39 = vector.shape_cast %38 : vector<16x16x36xbf16> to vector<256x36xbf16>
    %c0_30 = arith.constant 0 : index
    %c0_31 = arith.constant 0 : index
    %40 = vector.load %arg3[%c0_30, %c0_31] : memref<36x128xbf16, #tpu.memory_space<vmem>>, vector<36x128xbf16>
    %cst = arith.constant dense<0.000000e+00> : vector<256x128xf32>
    %41 = tpu.matmul %39, %40, %cst {dimension_numbers = #tpu.dot_dimension_numbers<[1], [0], [0], [1], [0, 0, 1, 1], [], []>} : vector<256x36xbf16>, vector<36x128xbf16>, vector<256x128xf32> -> vector<256x128xf32>
    %42 = arith.truncf %41 : vector<256x128xf32> to vector<256x128xbf16>
    %c0_32 = arith.constant 0 : index
    %c0_33 = arith.constant 0 : index
    %c0_34 = arith.constant 0 : index
    %43 = vector.load %arg4[%c0_32, %c0_33, %c0_34] : memref<1x256x128xbf16, #tpu.memory_space<vmem>>, vector<1x256x128xbf16>
    %44 = vector.shape_cast %43 : vector<1x256x128xbf16> to vector<256x128xbf16>
    %45 = vector.shape_cast %42 : vector<256x128xbf16> to vector<1x256x128xbf16>
    tpu.vector_store %arg4[%c0_32, %c0_33, %c0_34], %45 {strides = array<i32>} : memref<1x256x128xbf16, #tpu.memory_space<vmem>>, vector<1x256x128xbf16>,
    %cst_35 = arith.constant dense<0.000000e+00> : vector<128xf32>
    %46 = vector.multi_reduction <add>, %41, %cst_35 [0] : vector<256x128xf32> to vector<128xf32>
    %47 = vector.shape_cast %46 : vector<128xf32> to vector<1x128xf32>
    %48 = vector.shape_cast %47 : vector<1x128xf32> to vector<1x1x128xf32>
    %c0_36 = arith.constant 0 : index
    %c0_37 = arith.constant 0 : index
    %c0_38 = arith.constant 0 : index
    %c0_39 = arith.constant 0 : index
    %49 = vector.load %arg5[%c0_36, %c0_37, %c0_38, %c0_39] : memref<1x1x1x128xf32, #tpu.memory_space<vmem>>, vector<1x1x1x128xf32>
    %50 = vector.shape_cast %49 : vector<1x1x1x128xf32> to vector<1x1x128xf32>
    %51 = vector.shape_cast %48 : vector<1x1x128xf32> to vector<1x1x1x128xf32>
    tpu.vector_store %arg5[%c0_36, %c0_37, %c0_38, %c0_39], %51 {strides = array<i32>} : memref<1x1x1x128xf32, #tpu.memory_space<vmem>>, vector<1x1x1x128xf32>,
    %52 = arith.mulf %41, %41 : vector<256x128xf32>
    %cst_40 = arith.constant dense<0.000000e+00> : vector<128xf32>
    %53 = vector.multi_reduction <add>, %52, %cst_40 [0] : vector<256x128xf32> to vector<128xf32>
    %54 = vector.shape_cast %53 : vector<128xf32> to vector<1x128xf32>
    %55 = vector.shape_cast %54 : vector<1x128xf32> to vector<1x1x128xf32>
    %c0_41 = arith.constant 0 : index
    %c0_42 = arith.constant 0 : index
    %c0_43 = arith.constant 0 : index
    %c0_44 = arith.constant 0 : index
    %56 = vector.load %arg6[%c0_41, %c0_42, %c0_43, %c0_44] : memref<1x1x1x128xf32, #tpu.memory_space<vmem>>, vector<1x1x1x128xf32>
    %57 = vector.shape_cast %56 : vector<1x1x1x128xf32> to vector<1x1x128xf32>
    %58 = vector.shape_cast %55 : vector<1x1x128xf32> to vector<1x1x1x128xf32>
    tpu.vector_store %arg6[%c0_41, %c0_42, %c0_43, %c0_44], %58 {strides = array<i32>} : memref<1x1x1x128xf32, #tpu.memory_space<vmem>>, vector<1x1x1x128xf32>,
    return
  }
  func.func @transform_0(%arg0: i32, %arg1: i32) -> (i32, i32, i32, i32) {
    %c0_i32 = arith.constant 0 : i32
    %c0_i32_0 = arith.constant 0 : i32
    %c0_i32_1 = arith.constant 0 : i32
    %c0_i32_2 = arith.constant 0 : i32
    return %arg0, %c0_i32, %c0_i32_0, %c0_i32_1 : i32, i32, i32, i32
  }
  func.func @transform_1(%arg0: i32, %arg1: i32) -> (i32, i32) {
    %c0_i32 = arith.constant 0 : i32
    %c0_i32_0 = arith.constant 0 : i32
    %c0_i32_1 = arith.constant 0 : i32
    return %c0_i32, %c0_i32_0 : i32, i32
  }
  func.func @transform_2(%arg0: i32, %arg1: i32) -> (i32, i32, i32) {
    %c0_i32 = arith.constant 0 : i32
    %c0_i32_0 = arith.constant 0 : i32
    return %arg0, %arg1, %c0_i32 : i32, i32, i32
  }
  func.func @transform_3(%arg0: i32, %arg1: i32) -> (i32, i32, i32, i32) {
    %c0_i32 = arith.constant 0 : i32
    %c0_i32_0 = arith.constant 0 : i32
    %c0_i32_1 = arith.constant 0 : i32
    return %arg0, %arg1, %c0_i32, %c0_i32_0 : i32, i32, i32, i32
  }
  func.func @transform_4(%arg0: i32, %arg1: i32) -> (i32, i32, i32, i32) {
    %c0_i32 = arith.constant 0 : i32
    %c0_i32_0 = arith.constant 0 : i32
    %c0_i32_1 = arith.constant 0 : i32
    return %arg0, %arg1, %c0_i32, %c0_i32_0 : i32, i32, i32, i32
  }
}

</mosaic_0001>

<bundles_post_ra>
// kernel: tpu_custom_call.1
= control target key start
LH: loop header
LB: loop body
LE: loop exit
PB: predicated region body
PF: predicated region fallthrough
CT: control target
= control target key end

     0   :  { %10 = vsyncpa [#allocation3], 0  ;;  %s5078_s0 = inlined_call_operand.vmem [shape: bf16[2,18,18,4], index: 0, kind: input, shape index: {}]   ;;  %s5079_s1 = inlined_call_operand.vmem [shape: bf16[36,128], index: 1, kind: input, shape index: {}]   ;;  %s5080_s2 = inlined_call_operand.hbm [shape: bf16[2,256,128], index: 2, kind: output, shape index: {0}]   ;;  %s5081_s3 = inlined_call_operand.hbm [shape: f32[2,1,1,128], index: 3, kind: output, shape index: {1}]   ;;  %s5082_s4 = inlined_call_operand.hbm [shape: f32[2,1,1,128], index: 4, kind: output, shape index: {2}]  }
   0x1   :  { %12 = vsyncpa [#allocation3 + $0x1], 0 }
   0x2   :  { %13 = vsyncpa [#allocation5], 0 }
   0x3   :  { %15 = vsyncpa [#allocation5 + $0x1], 0  ;;  %s3805_s15 = smov 0   ;;  %s3807_s16 = smov 0  }
   0x4   :  { %s3809_s17 = smov 0   ;;  %s3811_s18 = smov 0  }
   0x5   :  { %s3813_s19 = smov 0   ;;  %s3815_s20 = smov 0  }
   0x6 LB: > { %s2882_s21 = sadd.s32 4294967295, %s3766_s20   ;;  %s5083_s22 = sadd.s32 4294967294, %s3766_s20   ;;  %s3766_s20 = sphi %s3815_s20, %s21_s20   ;;  %s3762_s19 = sphi %s3813_s19, %s5091_s19   ;;  %s3758_s18 = sphi %s3811_s18, %s5090_s18   ;;  %s3754_s17 = sphi %s3809_s17, %s5089_s17   ;;  %s3750_s16 = sphi %s3807_s16, %s5088_s16   ;;  %s3746_s15 = sphi %s3805_s15, %s5087_s15  }
   0x7   : > { %s33_s23 = sadd.s32 1, %s3762_s19  ;;  %s89_s24 = sadd.s32 1, %s3754_s17 }
   0x8   : > { %p35_p0 = scmp.ge.s32.totalorder %s33_s23, 2  ;;  %p99_p1 = scmp.ne.s32.totalorder %s3754_s17, %s3750_s16 }
   0x9   : > { %p100_p2 = scmp.eq.s32.totalorder %s2882_s21, 1  ;;  %p105_p3 = scmp.ne.s32.totalorder %s3750_s16, %s3746_s15 }
   0xa   : > { %s5093_s23 = smov (%p35_p0, %s33_s23), 0  ;;  %p106_p5 = scmp.eq.s32.totalorder %s5083_s22, 1 }
   0xb   : > { %p3847_p4 = por %p100_p2, %p99_p1  ;;  %s84_s26 = ssub.s32 %s3762_s19, %s5093_s23 }
   0xc   : > { %p2886_p6 = scmp.ge.s32.totalorder %s3766_s20, 1  ;;  %p87_p7 = scmp.eq.s32.totalorder %s84_s26, 0 }
   0xd   : > { %p3856_p8 = por %p106_p5, %p105_p3  ;;  %p191_p9 = scmp.lt.s32.totalorder %s3766_s20, 3 }
   0xe   : > { %s3862_s28 = scalar_select %p87_p7, %s3754_s17, %s89_s24  }
   0xf   : > { %p192_p10 = pnand %p2886_p6, %p191_p9 }
  0x10   : > { %p225_p11 = scmp.lt.s32.totalorder (!%p192_p10), %s3758_s18, 1  ;;  %s3768_s8 = smov (!%p192_p10), 12  }
  0x11   : > { %195 = sbr.rel (%p192_p10) target bundleno = 664 (0x298), region = 28  ;;  %s3769_s9 = smov (!%p192_p10), 20  }
  0x12   : > { %s3770_s10 = smov (!%p192_p10), 8   ;;  %s3771_s11 = smov (!%p192_p10), 4  }
  0x13   : > { %s3772_s12 = smov (!%p192_p10), 16   ;;  %s3773_s13 = smov (!%p192_p10), 24  }
  0x14   : > { %s3774_s14 = smov (!%p192_p10), 28   ;;  %s3775_s24 = smov (!%p192_p10), 32  }
  0x15   : > { %s3776_s5 = smov (!%p192_p10), [#allocation2]  }
  0x16   : > { %s226_s29 = scalar_select %p225_p11, %s3758_s18, 1  ;;  %vm837_vm0 = vcmask 1046528   ;;  %vm564_vm1 = vsmask.f32 7424  ;;  %vm2259_vm2 = vcmask 1041408   ;;  %vm1942_vm3 = vcmask 31744  }
  0x17   : > { %vm1975_vm4 = vcmask 64512   ;;  %vm2008_vm5 = vcmask 97280   ;;  %vm2041_vm6 = vcmask 130048   ;;  %vm2074_vm7 = vcmask 162816   ;;  %s3638_s6 = sshll.u32 %s3776_s5, 4  ;;  %s3639_s6 = int_to_ptr.vmem [resolvable:$false] %s3638_s6 }
  0x18   : > { %s3412_s30 = smul.u32 216, %s226_s29  ;;  %vm2107_vm8 = vcmask 195584   ;;  %vm2140_vm9 = vcmask 228352   ;;  %vm2173_vm10 = vcmask 261120   ;;  %vm2226_vm11 = vcmask 293888   ;;  %s3640_s26 = scalar_lea.vmem %s3639_s6, 4096 }
  0x1a   : > { %s3869_s7 = scalar_lea.vmem %s5078_s0, %s3412_s30 }
  0x1b   : > { %v2891_v0 = vld [vmem:[%s3869_s7 + $0x18] sm:$0xf]  ;;  %v2892_v1 = vld [vmem:[%s3869_s7 + $0x1c] sm:$0xf]  ;;  %v2889_v5 = vld [vmem:[%s3869_s7 + $0xc] sm:$0xf] }
  0x1c   : > { %v2938_v2 = vld [vmem:[%s3869_s7 + $0x18] sm:$0xe]  ;;  %v3874_v3 = vcombine.low %v2891_v0, %v2892_v1  ;;  %v2890_v6 = vld [vmem:[%s3869_s7 + $0x10] sm:$0xf]  ;;  %v2937_v7 = vld [vmem:[%s3869_s7 + $0xc] sm:$0xe] }
  0x1d   : > { %v3098_v4 = vcombine.low %v2938_v2, %v2892_v1  ;;  %v3879_v8 = vcombine.low %v2889_v5, %v2890_v6  ;;  %v3097_v9 = vcombine.low %v2937_v7, %v2890_v6  ;;  %v3882_v10 = vld [vmem:[%s3869_s7 + $0x14] ss:$0 sps:$4 sm:$0x11]   ;;  %v237_v12 = vld [vmem:[%s3869_s7 + $0x4] sm:$0xf] }
  0x1e   : > { %1000 = vrot.lane.b32.xlu1 %v3874_v3, %s3768_s8  ;;  %v1093_v11 = vshll.u32 %v3874_v3, 16  ;;  %v1351_v15 = vrot.slane %v3882_v10, 1  ;;  %v284_v16 = vld [vmem:[%s3869_s7] sm:$0xe]  ;;  %v1091_v21 = vshrl.u32 %v3874_v3, 16  ;;  %v1086_v59 = vshll.u32 %v3882_v10, 16 }
  0x1f   : > { %998 = vrot.lane.b32.xlu0 %v3879_v8, %s3768_s8  ;;  %v1081_v13 = vshll.u32 %v3879_v8, 16  ;;  %v1350_v14 = vrot.slane %v3097_v9, 1  ;;  %v1353_v17 = vrot.slane %v3098_v4, 1  ;;  %v3492_v18 = vld [vmem:[%s3869_s7 + $0x8] ss:$0 sps:$4 sm:$0x11]   ;;  %v3049_v19 = vcombine.low %v284_v16, %v237_v12 }
  0x20   : > { %v236_v20 = vld [vmem:[%s3869_s7] sm:$0xf]  ;;  %v238_v24 = vld [vmem:[%s3869_s7 + $0xc] sm:$0xf]  ;;  %v239_v25 = vld [vmem:[%s3869_s7 + $0x10] sm:$0xf] }
  0x21   : > { %v1352_v22 = vsel %vm837_vm0, %v1350_v14, %v1351_v15  ;;  %v3897_v23 = vcombine.low %v236_v20, %v237_v12  ;;  %v838_v26 = vrot.slane %v3049_v19, 1  ;;  %v839_v27 = vrot.slane %v3492_v18, 1  ;;  %v285_v28 = vld [vmem:[%s3869_s7 + $0xc] sm:$0xe]  ;;  %v2955_v43 = vld [vmem:[%s3869_s7 + $0x24] sm:$0xf] }
  0x22   : > { %v3902_v29 = vcombine.low %v238_v24, %v239_v25  ;;  %v573_v30 = vshll.u32 %v3492_v18, 16  ;;  %v3496_v31 = vld [vmem:[%s3869_s7 + $0x14] ss:$0 sps:$4 sm:$0x11]   ;;  %v3050_v32 = vcombine.low %v285_v28, %v239_v25  ;;  %v1095_v35 = vrot.slane %v1093_v11, 1 }
  0x23   : > { %1398 = vrot.lane.b32.xlu0 %v1352_v22, %s3769_s9  ;;  %v566_v33 = vshrl.u32 %v3897_v23, 16  ;;  %v568_v34 = vshll.u32 %v3897_v23, 16  ;;  %v840_v36 = vsel %vm837_vm0, %v838_v26, %v839_v27  ;;  %v3498_v38 = vld [vmem:[%s3869_s7 + $0x20] ss:$0 sps:$4 sm:$0x11]   ;;  %v842_v40 = vrot.slane %v3496_v31, 1 }
  0x24   : > { %v575_v37 = vrot.slane %v573_v30, 1  ;;  %886 = vrot.lane.b32.xlu1 %v840_v36, %s3770_s10  ;;  %v841_v39 = vrot.slane %v3050_v32, 1  ;;  %v578_v42 = vshrl.u32 %v3902_v29, 16  ;;  %v1354_v44 = vrot.slane %v3498_v38, 1  ;;  %v3915_v48 = vld [vmem:[%s3869_s7 + $0x28] sm:$0xf] }
  0x25   : > { %v570_v41 = vrot.slane %v568_v34, 1  ;;  %v580_v45 = vshll.u32 %v3902_v29, 16  ;;  %v585_v46 = vshll.u32 %v3496_v31, 16  ;;  %v1098_v47 = vshll.u32 %v3498_v38, 16  ;;  %v2953_v53 = vld [vmem:[%s3869_s7 + $0x18] sm:$0xf] }
  0x26   : > { %v843_v49 = vsel %vm837_vm0, %v841_v39, %v842_v40  ;;  %v1079_v51 = vshrl.u32 %v3879_v8, 16  ;;  %v1083_v52 = vrot.slane %v1081_v13, 1  ;;  %v2954_v56 = vld [vmem:[%s3869_s7 + $0x1c] sm:$0xf]  ;;  %v1096_v58 = vor.u32 %v1095_v35, %v1091_v21  ;;  %v3001_v7 = vld [vmem:[%s3869_s7 + $0x18] sm:$0xe] }
  0x27   : > { %v571_v50 = vor.u32 %v570_v41, %v566_v33  ;;  %v582_v54 = vrot.slane %v580_v45, 1  ;;  %v587_v55 = vrot.slane %v585_v46, 1  ;;  %v3114_v60 = vcombine.low %v2955_v43, %v3915_v48  ;;  %v3928_v1 = vld [vmem:[%s3869_s7 + $0x2c] ss:$0 sps:$4 sm:$0x11]  }
  0x28   : > { %888 = vrot.lane.b32.xlu1 %v843_v49, %s3770_s10  ;;  %v1355_v61 = vsel %vm837_vm0, %v1353_v17, %v1354_v44  ;;  %v1100_v63 = vrot.slane %v1098_v47, 1  ;;  %v3113_v0 = vcombine.low %v2953_v53, %v2954_v56  ;;  %v1084_v2 = vor.u32 %v1083_v52, %v1079_v51  ;;  %v3504_v5 = vld [vmem:[%s3869_s7 + $0x20] ss:$0 sps:$4 sm:$0x11]   ;;  %v240_v10 = vld [vmem:[%s3869_s7 + $0x18] sm:$0xf] }
  0x29   : > { %v576_v57 = vsel %vm564_vm1, %v571_v50, %v575_v37  ;;  %v583_v62 = vor.u32 %v582_v54, %v578_v42  ;;  %v1088_v3 = vrot.slane %v1086_v59, 1  ;;  %v1605_v4 = vshll.u32 %v3114_v60, 16  ;;  %v3937_v13 = vld [vmem:[%s3869_s7 + $0x1c] sm:$0xf]  ;;  %v242_v21 = vld [vmem:[%s3869_s7 + $0x24] sm:$0xf] }
  0x2a   : > { %757 = vrot.lane.b32.xlu0 %v576_v57, %s3771_s11  ;;  %v1593_v8 = vshll.u32 %v3113_v0, 16  ;;  %v1603_v9 = vshrl.u32 %v3114_v60, 16  ;;  %v1610_v12 = vshll.u32 %v3928_v1, 16  ;;  %v1101_v14 = vsel %vm564_vm1, %v1096_v58, %v1100_v63  ;;  %v3945_v17 = vld [vmem:[%s3869_s7 + $0x20] ss:$0 sps:$4 sm:$0x11]  }
  0x2b   : > { %v588_v6 = vsel %vm564_vm1, %v583_v62, %v587_v55  ;;  %v1607_v11 = vrot.slane %v1605_v4, 1  ;;  %v1591_v15 = vshrl.u32 %v3113_v0, 16  ;;  %v3942_v16 = vcombine.low %v240_v10, %v3937_v13  ;;  %v243_v22 = vld [vmem:[%s3869_s7 + $0x28] sm:$0xf]  ;;  %v3002_v37 = vld [vmem:[%s3869_s7 + $0x24] sm:$0xe] }
  0x2c   : > { %1400 = vrot.lane.b32.xlu1 %v1355_v61, %s3769_s9  ;;  %v1089_v18 = vsel %vm564_vm1, %v1084_v2, %v1088_v3  ;;  %v1595_v19 = vrot.slane %v1593_v8, 1  ;;  %v1598_v20 = vshll.u32 %v3504_v5, 16  ;;  %v3145_v24 = vcombine.low %v3001_v7, %v2954_v56  ;;  %v3508_v33 = vld [vmem:[%s3869_s7 + $0x2c] ss:$0 sps:$4 sm:$0x11]  }
  0x2d   : > { %v592_v25 = vshll.u32 %v3942_v16, 16  ;;  %v1608_v26 = vor.u32 %v1607_v11, %v1603_v9  ;;  %v1612_v27 = vrot.slane %v1610_v12, 1  ;;  %v597_v28 = vshll.u32 %v3945_v17, 16  ;;  %v287_v42 = vld [vmem:[%s3869_s7 + $0x24] sm:$0xe] }
  0x2e   : > { %759 = vrot.lane.b32.xlu0 %v588_v6, %s3771_s11  ;;  %v3953_v30 = vcombine.low %v242_v21, %v243_v22  ;;  %v590_v31 = vshrl.u32 %v3942_v16, 16  ;;  %v1596_v34 = vor.u32 %v1595_v19, %v1591_v15  ;;  %v1600_v35 = vrot.slane %v1598_v20, 1  ;;  %v286_v47 = vld [vmem:[%s3869_s7 + $0x18] sm:$0xe]  ;;  %v2895_v51 = vld [vmem:[%s3869_s7 + $0x30] sm:$0xf] }
  0x2f   : > { %v594_v32 = vrot.slane %v592_v25, 1  ;;  %v1613_v38 = vsel %vm564_vm1, %v1608_v26, %v1612_v27  ;;  %v599_v39 = vrot.slane %v597_v28, 1  ;;  %v1862_v40 = vrot.slane %v3145_v24, 1  ;;  %v2896_v52 = vld [vmem:[%s3869_s7 + $0x34] sm:$0xf] }
  0x30   : > { %1272 = vrot.lane.b32.xlu1 %v1101_v14, %s3772_s12  ;;  %v604_v36 = vshll.u32 %v3953_v30, 16  ;;  %v1863_v41 = vrot.slane %v3504_v5, 1  ;;  %v602_v44 = vshrl.u32 %v3953_v30, 16  ;;  %v609_v46 = vshll.u32 %v3508_v33, 16  ;;  %v2893_v53 = vld [vmem:[%s3869_s7 + $0x24] sm:$0xf] }
  0x31   : > { %v595_v43 = vor.u32 %v594_v32, %v590_v31  ;;  %v3146_v49 = vcombine.low %v3002_v37, %v3915_v48  ;;  %v1601_v50 = vsel %vm564_vm1, %v1596_v34, %v1600_v35  ;;  %v2894_v54 = vld [vmem:[%s3869_s7 + $0x28] sm:$0xf]  ;;  %v3052_v56 = vcombine.low %v287_v42, %v243_v22  ;;  %v3516_v9 = vld [vmem:[%s3869_s7 + $0x2c] ss:$0 sps:$4 sm:$0x11]  }
  0x32   : > { %1270 = vrot.lane.b32.xlu0 %v1089_v18, %s3772_s12  ;;  %v606_v45 = vrot.slane %v604_v36, 1  ;;  %v1864_v55 = vsel %vm837_vm0, %v1862_v40, %v1863_v41  ;;  %v611_v59 = vrot.slane %v609_v46, 1  ;;  %v3068_v48 = vcombine.low %v2895_v51, %v2896_v52  ;;  %v2940_v10 = vld [vmem:[%s3869_s7 + $0x30] sm:$0xe]  ;;  %v2939_v11 = vld [vmem:[%s3869_s7 + $0x24] sm:$0xe] }
  0x33   : > { %v600_v57 = vsel %vm564_vm1, %v595_v43, %v599_v39  ;;  %v1866_v61 = vrot.slane %v3928_v1, 1  ;;  %v3051_v62 = vcombine.low %v286_v47, %v3937_v13  ;;  %v3067_v63 = vcombine.low %v2893_v53, %v2894_v54  ;;  %v2959_v19 = vld [vmem:[%s3869_s7 + $0x3c] sm:$0xf]  ;;  %v3995_v20 = vld [vmem:[%s3869_s7 + $0x40] sm:$0xf] }
  0x34   : > { %1512 = vrot.lane.b32.xlu1 %v3114_v60, %s3773_s13  ;;  %v607_v58 = vor.u32 %v606_v45, %v602_v44  ;;  %v1865_v60 = vrot.slane %v3146_v49, 1  ;;  %v847_v3 = vrot.slane %v3052_v56, 1  ;;  %v848_v4 = vrot.slane %v3508_v33, 1  ;;  %v2957_v24 = vld [vmem:[%s3869_s7 + $0x30] sm:$0xf] }
  0x35   : > { %v1117_v5 = vshll.u32 %v3068_v48, 16  ;;  %v844_v6 = vrot.slane %v3051_v62, 1  ;;  %v845_v7 = vrot.slane %v3945_v17, 1  ;;  %v1105_v8 = vshll.u32 %v3067_v63, 16  ;;  %v2958_v25 = vld [vmem:[%s3869_s7 + $0x34] sm:$0xf] }
  0x36   : > { %1510 = vrot.lane.b32.xlu0 %v3113_v0, %s3773_s13  ;;  %v3980_v0 = vld [vmem:[%s3869_s7 + $0x38] ss:$0 sps:$4 sm:$0x11]   ;;  %v612_v2 = vsel %vm564_vm1, %v607_v58, %v611_v59  ;;  %v1867_v1 = vsel %vm837_vm0, %v1865_v60, %v1866_v61  ;;  %v1115_v12 = vshrl.u32 %v3068_v48, 16  ;;  %v849_v14 = vsel %vm837_vm0, %v847_v3, %v848_v4  ;;  %v244_v36 = vld [vmem:[%s3869_s7 + $0x30] sm:$0xf] }
  0x37   : > { %v1122_v13 = vshll.u32 %v3980_v0, 16  ;;  %v1119_v15 = vrot.slane %v1117_v5, 1  ;;  %v1103_v18 = vshrl.u32 %v3067_v63, 16  ;;  %v846_v17 = vsel %vm837_vm0, %v844_v6, %v845_v7  ;;  %v4005_v37 = vld [vmem:[%s3869_s7 + $0x34] sm:$0xf] }
  0x38   : > { %1784 = vrot.lane.b32.xlu1 %v1613_v38, %s3774_s14  ;;  %v1107_v21 = vrot.slane %v1105_v8, 1  ;;  %v1110_v22 = vshll.u32 %v3516_v9, 16  ;;  %v3100_v26 = vcombine.low %v2940_v10, %v2896_v52  ;;  %v3099_v27 = vcombine.low %v2939_v11, %v2894_v54  ;;  %v4010_v43 = vld [vmem:[%s3869_s7 + $0x44] ss:$0 sps:$4 sm:$0x11]  }
  0x39   : > { %v3116_v28 = vcombine.low %v2959_v19, %v3995_v20  ;;  %v1120_v31 = vor.u32 %v1119_v15, %v1115_v12  ;;  %v1124_v32 = vrot.slane %v1122_v13, 1  ;;  %v3115_v33 = vcombine.low %v2957_v24, %v2958_v25  ;;  %v3522_v46 = vld [vmem:[%s3869_s7 + $0x38] ss:$0 sps:$4 sm:$0x11]   ;;  %v247_v51 = vld [vmem:[%s3869_s7 + $0x40] sm:$0xf] }
  0x3a   : > { %1782 = vrot.lane.b32.xlu0 %v1601_v50, %s3774_s14  ;;  %v1108_v34 = vor.u32 %v1107_v21, %v1103_v18  ;;  %v1112_v35 = vrot.slane %v1110_v22, 1  ;;  %v1359_v38 = vrot.slane %v3100_v26, 1  ;;  %v1360_v39 = vrot.slane %v3980_v0, 1  ;;  %v246_v50 = vld [vmem:[%s3869_s7 + $0x3c] sm:$0xf] }
  0x3b   : > { %v1356_v40 = vrot.slane %v3099_v27, 1  ;;  %v1357_v41 = vrot.slane %v3516_v9, 1  ;;  %v1629_v42 = vshll.u32 %v3116_v28, 16  ;;  %v1125_v44 = vsel %vm564_vm1, %v1120_v31, %v1124_v32  ;;  %v3526_v6 = vld [vmem:[%s3869_s7 + $0x44] ss:$0 sps:$4 sm:$0x11]  }
  0x3c   : > { %761 = vrot.lane.b32.xlu1 %v600_v57, %s3771_s11  ;;  %v1617_v45 = vshll.u32 %v3115_v33, 16  ;;  %v4016_v47 = vcombine.low %v244_v36, %v4005_v37  ;;  %v1113_v49 = vsel %vm564_vm1, %v1108_v34, %v1112_v35  ;;  %v1627_v52 = vshrl.u32 %v3116_v28, 16  ;;  %v3003_v57 = vld [vmem:[%s3869_s7 + $0x30] sm:$0xe]  ;;  %v289_v21 = vld [vmem:[%s3869_s7 + $0x3c] sm:$0xe] }
  0x3d   : > { %v1631_v53 = vrot.slane %v1629_v42, 1  ;;  %v1634_v54 = vshll.u32 %v4010_v43, 16  ;;  %v1361_v56 = vsel %vm837_vm0, %v1359_v38, %v1360_v39  ;;  %v4030_v59 = vcombine.low %v246_v50, %v247_v51  ;;  %v2900_v24 = vld [vmem:[%s3869_s7 + $0x4c] sm:$0xf]  ;;  %v2897_v26 = vld [vmem:[%s3869_s7 + $0x3c] sm:$0xf] }
  0x3e   : > { %1910 = vrot.lane.b32.xlu0 %v1864_v55, %s3775_s24  ;;  %v4024_v55 = vld [vmem:[%s3869_s7 + $0x38] ss:$0 sps:$4 sm:$0x11]   ;;  %v616_v58 = vshll.u32 %v4016_v47, 16  ;;  %v1615_v60 = vshrl.u32 %v3115_v33, 16  ;;  %v1619_v61 = vrot.slane %v1617_v45, 1  ;;  %v3147_v0 = vcombine.low %v3003_v57, %v2958_v25 }
  0x3f   : > { %v1622_v62 = vshll.u32 %v3522_v46, 16  ;;  %v1636_v3 = vrot.slane %v1634_v54, 1  ;;  %v621_v4 = vshll.u32 %v4024_v55, 16  ;;  %v614_v5 = vshrl.u32 %v4016_v47, 16  ;;  %v288_v25 = vld [vmem:[%s3869_s7 + $0x30] sm:$0xe] }
  0x40   : > { %763 = vrot.lane.b32.xlu1 %v612_v2, %s3771_s11  ;;  %v1632_v2 = vor.u32 %v1631_v53, %v1627_v52  ;;  %v628_v7 = vshll.u32 %v4030_v59, 16  ;;  %v1620_v8 = vor.u32 %v1619_v61, %v1615_v60  ;;  %v1868_v13 = vrot.slane %v3147_v0, 1  ;;  %v2898_v27 = vld [vmem:[%s3869_s7 + $0x40] sm:$0xf]  ;;  %v2942_v53 = vld [vmem:[%s3869_s7 + $0x48] sm:$0xe] }
  0x41   : > { %v1624_v9 = vrot.slane %v1622_v62, 1  ;;  %v623_v12 = vrot.slane %v621_v4, 1  ;;  %v626_v18 = vshrl.u32 %v4030_v59, 16  ;;  %v3054_v31 = vcombine.low %v289_v21, %v247_v51  ;;  %v2963_v54 = vld [vmem:[%s3869_s7 + $0x54] sm:$0xf] }
  0x42   : > { %1912 = vrot.lane.b32.xlu0 %v1867_v1, %s3775_s24  ;;  %v618_v1 = vrot.slane %v616_v58, 1  ;;  %v1637_v11 = vsel %vm564_vm1, %v1632_v2, %v1636_v3  ;;  %v630_v19 = vrot.slane %v628_v7, 1  ;;  %v1872_v38 = vrot.slane %v4010_v43, 1  ;;  %v4074_v60 = vld [vmem:[%s3869_s7 + $0x58] sm:$0xf] }
  0x43   : > { %v1625_v22 = vsel %vm564_vm1, %v1620_v8, %v1624_v9  ;;  %v3053_v39 = vcombine.low %v288_v25, %v4005_v37  ;;  %v853_v42 = vrot.slane %v3054_v31, 1  ;;  %v851_v50 = vrot.slane %v4024_v55, 1  ;;  %v2941_v61 = vld [vmem:[%s3869_s7 + $0x3c] sm:$0xe]  ;;  %v2961_v0 = vld [vmem:[%s3869_s7 + $0x48] sm:$0xf] }
  0x44   : > { %892 = vrot.lane.b32.xlu1 %v849_v14, %s3770_s10  ;;  %v1869_v14 = vrot.slane %v3522_v46, 1  ;;  %v619_v15 = vor.u32 %v618_v1, %v614_v5  ;;  %v4080_v2 = vld [vmem:[%s3869_s7 + $0x4c] sm:$0xf]  ;;  %v3102_v3 = vcombine.low %v2942_v53, %v2900_v24  ;;  %v3118_v4 = vcombine.low %v2963_v54, %v4074_v60  ;;  %v250_v25 = vld [vmem:[%s3869_s7 + $0x54] sm:$0xf] }
  0x45   : > { %v850_v37 = vrot.slane %v3053_v39, 1  ;;  %v3101_v5 = vcombine.low %v2941_v61, %v2898_v27  ;;  %v3117_v9 = vcombine.low %v2961_v0, %v4080_v2  ;;  %v291_v61 = vld [vmem:[%s3869_s7 + $0x54] sm:$0xe] }
  0x46   : > { %890 = vrot.lane.b32.xlu0 %v846_v17, %s3770_s10  ;;  %v633_v17 = vshll.u32 %v3526_v6, 16  ;;  %v624_v32 = vsel %vm564_vm1, %v619_v15, %v623_v12  ;;  %v1870_v36 = vsel %vm837_vm0, %v1868_v13, %v1869_v14  ;;  %v1365_v12 = vrot.slane %v3102_v3, 1  ;;  %v4093_v15 = vld [vmem:[%s3869_s7 + $0x5c] ss:$0 sps:$4 sm:$0x11]  }
  0x47   : > { %v852_v55 = vsel %vm837_vm0, %v850_v37, %v851_v50  ;;  %v1653_v14 = vshll.u32 %v3118_v4, 16  ;;  %v1658_v31 = vshll.u32 %v4093_v15, 16  ;;  %v1639_v39 = vshrl.u32 %v3117_v9, 16 }
  0x48   : > { %1004 = vrot.lane.b32.xlu1 %v3068_v48, %s3768_s8  ;;  %v1358_v48 = vsel %vm837_vm0, %v1356_v40, %v1357_v41  ;;  %v635_v34 = vrot.slane %v633_v17, 1  ;;  %v3069_v40 = vcombine.low %v2897_v26, %v2898_v27  ;;  %v4059_v41 = vld [vmem:[%s3869_s7 + $0x50] ss:$0 sps:$4 sm:$0x11]   ;;  %v4106_v26 = vld [vmem:[%s3869_s7 + $0x58] sm:$0xf] }
  0x49   : > { %v1146_v58 = vshll.u32 %v4059_v41, 16  ;;  %v1366_v13 = vrot.slane %v4059_v41, 1  ;;  %v4098_v17 = vld [vmem:[%s3869_s7 + $0x50] ss:$0 sps:$4 sm:$0x11]   ;;  %v1651_v27 = vshrl.u32 %v3118_v4, 16 }
  0x4a   : > { %1002 = vrot.lane.b32.xlu0 %v3067_v63, %s3768_s8  ;;  %v3004_v63 = vld [vmem:[%s3869_s7 + $0x3c] sm:$0xe]  ;;  %v1129_v51 = vshll.u32 %v3069_v40, 16  ;;  %v1127_v62 = vshrl.u32 %v3069_v40, 16  ;;  %v1646_v41 = vshll.u32 %v4098_v17, 16 }
  0x4b   : > { %v3148_v10 = vcombine.low %v3004_v63, %v3995_v20  ;;  %v2899_v20 = vld [vmem:[%s3869_s7 + $0x48] sm:$0xf] }
  0x4c   : > { %1276 = vrot.lane.b32.xlu1 %v1125_v44, %s3772_s12  ;;  %v3070_v35 = vcombine.low %v2899_v20, %v2900_v24  ;;  %v854_v44 = vrot.slane %v3526_v6, 1  ;;  %v1131_v63 = vrot.slane %v1129_v51, 1  ;;  %v1148_v6 = vrot.slane %v1146_v58, 1  ;;  %v3573_v58 = vld [vmem:[%s5079_s1] sm:$0xff]  }
  0x4d   : > { %v1641_v24 = vshll.u32 %v3117_v9, 16 }
  0x4e   : > { %1274 = vrot.lane.b32.xlu0 %v1113_v49, %s3772_s12  ;;  %v1141_v46 = vshll.u32 %v3070_v35, 16  ;;  %v3534_v49 = vld [vmem:[%s3869_s7 + $0x44] ss:$0 sps:$4 sm:$0x11]   ;;  %v855_v52 = vsel %vm837_vm0, %v853_v42, %v854_v44  ;;  %v1132_v8 = vor.u32 %v1131_v63, %v1127_v62  ;;  %v3005_v42 = vld [vmem:[%s3869_s7 + $0x48] sm:$0xe] }
  0x4f   : > { %v1363_v20 = vrot.slane %v3534_v49, 1  ;;  %v3570_v44 = vld [vmem:[%s5079_s1 + $0x8] sm:$0xff]   ;;  %v3149_v53 = vcombine.low %v3005_v42, %v4080_v2  ;;  %v2903_v62 = vld [vmem:[%s3869_s7 + $0x60] sm:$0xf] }
  0x50   : > { %1404 = vrot.lane.b32.xlu1 %v1361_v56, %s3769_s9  ;;  %v1139_v56 = vshrl.u32 %v3070_v35, 16  ;;  %v1143_v57 = vrot.slane %v1141_v46, 1  ;;  %v1660_v46 = vrot.slane %v1658_v31, 1  ;;  %v3551_v31 = vld [vmem:[%s3869_s7 + $0x68] ss:$0 sps:$4 sm:$0x11]  }
  0x51   : > { %v1170_v42 = vshll.u32 %v3551_v31, 16 }
  0x52   : > { %1402 = vrot.lane.b32.xlu0 %v1358_v48, %s3769_s9  ;;  %v1134_v48 = vshll.u32 %v3534_v49, 16  ;;  %v1144_v1 = vor.u32 %v1143_v57, %v1139_v56  ;;  %v1648_v56 = vrot.slane %v1646_v41, 1  ;;  %v3006_v57 = vld [vmem:[%s3869_s7 + $0x54] sm:$0xe] }
  0x54   : > { %1516 = vrot.lane.b32.xlu1 %v3116_v28, %s3773_s13  ;;  %v1871_v28 = vrot.slane %v3148_v10, 1  ;;  %v1136_v7 = vrot.slane %v1134_v48, 1  ;;  %v248_v10 = vld [vmem:[%s3869_s7 + $0x48] sm:$0xf] }
  0x56   : > { %1514 = vrot.lane.b32.xlu0 %v3115_v33, %s3773_s13  ;;  %v631_v33 = vor.u32 %v630_v19, %v626_v18  ;;  %v1873_v43 = vsel %vm837_vm0, %v1871_v28, %v1872_v38  ;;  %v1149_v18 = vsel %vm564_vm1, %v1144_v1, %v1148_v6  ;;  %v1362_v19 = vrot.slane %v3101_v5, 1  ;;  %v4149_v5 = vld [vmem:[%s3869_s7 + $0x64] sm:$0xf] }
  0x57   : > { %v1655_v28 = vrot.slane %v1653_v14, 1  ;;  %v1874_v6 = vrot.slane %v3149_v53, 1 }
  0x58   : > { %1788 = vrot.lane.b32.xlu1 %v1637_v11, %s3774_s14  ;;  %v636_v45 = vsel %vm564_vm1, %v631_v33, %v635_v34  ;;  %v4088_v11 = vld [vmem:[%s3869_s7 + $0x4c] sm:$0xf]  ;;  %v1367_v33 = vsel %vm837_vm0, %v1365_v12, %v1366_v13  ;;  %v1364_v38 = vsel %vm837_vm0, %v1362_v19, %v1363_v20  ;;  %v2902_v12 = vld [vmem:[%s3869_s7 + $0x58] sm:$0xf]  ;;  %v3072_v13 = vcombine.low %v2903_v62, %v4149_v5  ;;  %v4194_v62 = vld [vmem:[%s3869_s7 + $0x64] sm:$0xf] }
  0x59   : > { %v4101_v21 = vcombine.low %v248_v10, %v4088_v11  ;;  %v2901_v10 = vld [vmem:[%s3869_s7 + $0x54] sm:$0xf]  ;;  %v1878_v20 = vrot.slane %v4093_v15, 1 }
  0x5a   : > { %1786 = vrot.lane.b32.xlu0 %v1625_v22, %s3774_s14  ;;  %v1137_v22 = vsel %vm564_vm1, %v1132_v8, %v1136_v7  ;;  %v1875_v7 = vrot.slane %v4098_v17, 1  ;;  %v290_v8 = vld [vmem:[%s3869_s7 + $0x48] sm:$0xe] }
  0x5b   : > { %v640_v34 = vshll.u32 %v4101_v21, 16  ;;  %v638_v37 = vshrl.u32 %v4101_v21, 16  ;;  %v3055_v19 = vcombine.low %v290_v8, %v4088_v11 }
  0x5c   : > { %765 = vrot.lane.b32.xlu1 %v624_v32, %s3771_s11  ;;  %v4111_v32 = vld [vmem:[%s3869_s7 + $0x50] ss:$0 sps:$4 sm:$0x11]   ;;  %v1876_v17 = vsel %vm837_vm0, %v1874_v6, %v1875_v7  ;;  %v4203_v7 = vld [vmem:[%s3869_s7 + $0x68] ss:$0 sps:$4 sm:$0x11]  }
  0x5d   : > { %v645_v49 = vshll.u32 %v4111_v32, 16  ;;  %v642_v50 = vrot.slane %v640_v34, 1  ;;  %v856_v15 = vrot.slane %v3055_v19, 1 }
  0x5e   : > { %1914 = vrot.lane.b32.xlu0 %v1870_v36, %s3775_s24  ;;  %v3565_v36 = vld [vmem:[%s5079_s1 + $0x10] ss:$0 sps:$4 sm:$0x33]  }
  0x5f   : > { %3410 = vmatprep.subr.msk.bf16.mxu0 %vm2259_vm2, %v3565_v36  ;;  %3411 = vmatprep.subr.msk.bf16.mxu1 %vm2259_vm2, %v3565_v36  ;;  %v643_v63 = vor.u32 %v642_v50, %v638_v37  ;;  %v2965_v50 = vld [vmem:[%s3869_s7 + $0x60] sm:$0xf] }
  0x60   : > { %767 = vrot.lane.b32.xlu1 %v636_v45, %s3771_s11  ;;  %v1656_v45 = vor.u32 %v1655_v28, %v1651_v27 }
  0x62   : > { %1916 = vrot.lane.b32.xlu0 %v1873_v43, %s3775_s24  ;;  %v4131_v43 = vld [vmem:[%s3869_s7 + $0x5c] ss:$0 sps:$4 sm:$0x11]   ;;  %v1661_v48 = vsel %vm564_vm1, %v1656_v45, %v1660_v46  ;;  %v2967_v45 = vld [vmem:[%s3869_s7 + $0x6c] sm:$0xf] }
  0x63   : > { %v657_v3 = vshll.u32 %v4131_v43, 16  ;;  %v860_v28 = vrot.slane %v4131_v43, 1  ;;  %v4180_v46 = vld [vmem:[%s3869_s7 + $0x70] sm:$0xf] }
  0x64   : > { %896 = vrot.lane.b32.xlu1 %v855_v52, %s3770_s10  ;;  %v2261_v52 = vsel %vm2259_vm2, %v3565_v36, 0  ;;  %v3552_v36 = vld [vmem:[%s3869_s7 + $0x5c] ss:$0 sps:$4 sm:$0x11]  }
  0x65   : > { %3367 = vmatpush3.bf16.msra.mxu0 %v2261_v52  ;;  %3407 = vmatpush3.bf16.msra.mxu1 %v2261_v52  ;;  %v1158_v37 = vshll.u32 %v3552_v36, 16 }
  0x66   : > { %894 = vrot.lane.b32.xlu0 %v852_v55, %s3770_s10  ;;  %3368 = vmatprep.subr.bf16.mxu0 %v3570_v44  ;;  %v647_v55 = vrot.slane %v645_v49, 1 }
  0x67   : > { %3405 = vmatprep.subr.bf16.mxu1 %v3570_v44 }
  0x68   : > { %1008 = vrot.lane.b32.xlu1 %v3070_v35, %s3768_s8  ;;  %v4117_v35 = vcombine.low %v250_v25, %v4106_v26  ;;  %v857_v25 = vrot.slane %v4111_v32, 1  ;;  %v2944_v32 = vld [vmem:[%s3869_s7 + $0x60] sm:$0xe] }
  0x69   : > { %3369 = vmatpush3.bf16.msra.mxu0 %v3570_v44  ;;  %3408 = vmatpush3.bf16.msra.mxu1 %v3570_v44  ;;  %v3104_v52 = vcombine.low %v2944_v32, %v4149_v5  ;;  %v4198_v5 = vld [vmem:[%s3869_s7 + $0x74] ss:$0 sps:$4 sm:$0x11]  }
  0x6a   : > { %1006 = vrot.lane.b32.xlu0 %v3069_v40, %s3768_s8  ;;  %v1643_v40 = vrot.slane %v1641_v24, 1  ;;  %v652_v51 = vshll.u32 %v4117_v35, 16  ;;  %v650_v0 = vshrl.u32 %v4117_v35, 16  ;;  %3370 = vmatprep.subr.bf16.mxu0 %v3573_v58  ;;  %v3071_v24 = vcombine.low %v2901_v10, %v2902_v12 }
  0x6b   : > { %3406 = vmatprep.subr.bf16.mxu1 %v3573_v58  ;;  %v858_v49 = vsel %vm837_vm0, %v856_v15, %v857_v25 }
  0x6c   : > { %1280 = vrot.lane.b32.xlu1 %v1149_v18, %s3772_s12  ;;  %v1644_v54 = vor.u32 %v1643_v40, %v1639_v39  ;;  %v654_v2 = vrot.slane %v652_v51, 1  ;;  %v659_v18 = vrot.slane %v657_v3, 1  ;;  %v1153_v34 = vshll.u32 %v3071_v24, 16  ;;  %v4185_v51 = vld [vmem:[%s3869_s7 + $0x64] sm:$0xf] }
  0x6d   : > { %3371 = vmatpush3.bf16.msra.mxu0 %v3573_v58  ;;  %3409 = vmatpush3.bf16.msra.mxu1 %v3573_v58  ;;  %v1163_v39 = vshrl.u32 %v3072_v13, 16  ;;  %v1151_v44 = vshrl.u32 %v3071_v24, 16  ;;  %v3119_v58 = vcombine.low %v2965_v50, %v4185_v51 }
  0x6e   : > { %1278 = vrot.lane.b32.xlu0 %v1137_v22, %s3772_s12  ;;  %v1649_v1 = vsel %vm564_vm1, %v1644_v54, %v1648_v56  ;;  %v655_v14 = vor.u32 %v654_v2, %v650_v0  ;;  %v1155_v43 = vrot.slane %v1153_v34, 1  ;;  %v3120_v54 = vcombine.low %v2967_v45, %v4180_v46  ;;  %v4234_v34 = vld [vmem:[%s3869_s7 + $0x74] ss:$0 sps:$4 sm:$0x11]  }
  0x6f   : > { %v1372_v0 = vrot.slane %v3551_v31, 1  ;;  %v1665_v6 = vshll.u32 %v3119_v58, 16 }
  0x70   : > { %1408 = vrot.lane.b32.xlu1 %v1367_v33, %s3769_s9  ;;  %v660_v11 = vsel %vm564_vm1, %v655_v14, %v659_v18  ;;  %v1677_v3 = vshll.u32 %v3120_v54, 16  ;;  %v1682_v14 = vshll.u32 %v4198_v5, 16  ;;  %v4216_v18 = vld [vmem:[%s3869_s7 + $0x68] ss:$0 sps:$4 sm:$0x11]  }
  0x71   : > { %v1667_v25 = vrot.slane %v1665_v6, 1 }
  0x72   : > { %1406 = vrot.lane.b32.xlu0 %v1364_v38, %s3769_s9  ;;  %v2943_v38 = vld [vmem:[%s3869_s7 + $0x54] sm:$0xe]  ;;  %v1684_v31 = vrot.slane %v1682_v14, 1  ;;  %v866_v14 = vrot.slane %v4234_v34, 1 }
  0x73   : > { %v3103_v53 = vcombine.low %v2943_v38, %v2902_v12  ;;  %v254_v12 = vld [vmem:[%s3869_s7 + $0x6c] sm:$0xf] }
  0x74   : > { %1520 = vrot.lane.b32.xlu1 %v3118_v4, %s3773_s13  ;;  %v3150_v4 = vcombine.low %v3006_v57, %v4074_v60  ;;  %v648_v60 = vsel %vm564_vm1, %v643_v63, %v647_v55  ;;  %v1172_v57 = vrot.slane %v1170_v42, 1  ;;  %v1160_v55 = vrot.slane %v1158_v37, 1  ;;  %v3008_v42 = vld [vmem:[%s3869_s7 + $0x6c] sm:$0xe] }
  0x75   : > { %v1371_v63 = vrot.slane %v3104_v52, 1  ;;  %v1368_v2 = vrot.slane %v3103_v53, 1  ;;  %v681_v52 = vshll.u32 %v4234_v34, 16  ;;  %v292_v53 = vld [vmem:[%s3869_s7 + $0x60] sm:$0xe] }
  0x76   : > { %1518 = vrot.lane.b32.xlu0 %v3117_v9, %s3773_s13  ;;  %v3056_v9 = vcombine.low %v291_v61, %v4106_v26  ;;  %v1877_v22 = vrot.slane %v3150_v4, 1  ;;  %v1165_v26 = vshll.u32 %v3072_v13, 16  ;;  %v252_v61 = vld [vmem:[%s3869_s7 + $0x60] sm:$0xf] }
  0x77   : > { %v4206_v8 = vcombine.low %v252_v61, %v4194_v62  ;;  %v1373_v19 = vsel %vm837_vm0, %v1371_v63, %v1372_v0  ;;  %v2907_v61 = vld [vmem:[%s3869_s7 + $0x78] sm:$0xf]  ;;  %v2905_v63 = vld [vmem:[%s3869_s7 + $0x6c] sm:$0xf]  ;;  %v4261_v0 = vld [vmem:[%s3869_s7 + $0x70] sm:$0xf] }
  0x78   : > { %1792 = vrot.lane.b32.xlu1 %v1661_v48, %s3774_s14  ;;  %v859_v27 = vrot.slane %v3056_v9, 1  ;;  %v1879_v33 = vsel %vm837_vm0, %v1877_v22, %v1878_v20  ;;  %v1167_v40 = vrot.slane %v1165_v26, 1  ;;  %v1156_v48 = vor.u32 %v1155_v43, %v1151_v44  ;;  %v4211_v9 = vld [vmem:[%s3869_s7 + $0x70] sm:$0xf] }
  0x79   : > { %v4222_v22 = vcombine.low %v254_v12, %v4211_v9  ;;  %v1670_v26 = vshll.u32 %v4203_v7, 16 }
  0x7a   : > { %1790 = vrot.lane.b32.xlu0 %v1649_v1, %s3774_s14  ;;  %v861_v41 = vsel %vm837_vm0, %v859_v27, %v860_v28  ;;  %v1168_v56 = vor.u32 %v1167_v40, %v1163_v39  ;;  %v1369_v1 = vrot.slane %v3552_v36, 1  ;;  %v1161_v10 = vsel %vm564_vm1, %v1156_v48, %v1160_v55 }
  0x7b   : > { %v662_v36 = vshrl.u32 %v4206_v8, 16  ;;  %v676_v38 = vshll.u32 %v4222_v22, 16  ;;  %v674_v50 = vshrl.u32 %v4222_v22, 16  ;;  %v1881_v55 = vrot.slane %v4203_v7, 1 }
  0x7c   : > { %769 = vrot.lane.b32.xlu1 %v648_v60, %s3771_s11  ;;  %v1173_v4 = vsel %vm564_vm1, %v1168_v56, %v1172_v57  ;;  %v1679_v60 = vrot.slane %v1677_v3, 1  ;;  %v1370_v20 = vsel %vm837_vm0, %v1368_v2, %v1369_v1  ;;  %v3057_v3 = vcombine.low %v292_v53, %v4194_v62  ;;  %v4315_v53 = vld [vmem:[%s3869_s7 + $0x7c] sm:$0xf] }
  0x7d   : > { %v683_v1 = vrot.slane %v681_v52, 1  ;;  %v4276_v62 = vcombine.low %v2905_v63, %v4261_v0  ;;  %v2969_v52 = vld [vmem:[%s3869_s7 + $0x78] sm:$0xf] }
  0x7e   : > { %1918 = vrot.lane.b32.xlu0 %v1876_v17, %s3775_s24  ;;  %v664_v17 = vshll.u32 %v4206_v8, 16 }
  0x80   : > { %771 = vrot.lane.b32.xlu1 %v660_v11, %s3771_s11  ;;  %v3007_v11 = vld [vmem:[%s3869_s7 + $0x60] sm:$0xe]  ;;  %v666_v32 = vrot.slane %v664_v17, 1  ;;  %v863_v17 = vrot.slane %v4216_v18, 1 }
  0x81   : > { %v3151_v39 = vcombine.low %v3007_v11, %v4185_v51  ;;  %v678_v51 = vrot.slane %v676_v38, 1  ;;  %v1177_v11 = vshll.u32 %v4276_v62, 16 }
  0x82   : > { %1920 = vrot.lane.b32.xlu0 %v1879_v33, %s3775_s24  ;;  %v669_v33 = vshll.u32 %v4216_v18, 16  ;;  %v667_v37 = vor.u32 %v666_v32, %v662_v36  ;;  %v2946_v18 = vld [vmem:[%s3869_s7 + $0x78] sm:$0xe] }
  0x83   : > { %v1880_v48 = vrot.slane %v3151_v39, 1  ;;  %v2971_v39 = vld [vmem:[%s3869_s7 + $0x84] sm:$0xf] }
  0x84   : > { %900 = vrot.lane.b32.xlu1 %v861_v41, %s3770_s10  ;;  %v1672_v41 = vrot.slane %v1670_v26, 1  ;;  %v671_v45 = vrot.slane %v669_v33, 1  ;;  %v2945_v33 = vld [vmem:[%s3869_s7 + $0x6c] sm:$0xe] }
  0x86   : > { %898 = vrot.lane.b32.xlu0 %v858_v49, %s3770_s10  ;;  %v293_v49 = vld [vmem:[%s3869_s7 + $0x6c] sm:$0xe] }
  0x87   : > { %v3058_v2 = vcombine.low %v293_v49, %v4211_v9  ;;  %v1884_v9 = vrot.slane %v4198_v5, 1 }
  0x88   : > { %1012 = vrot.lane.b32.xlu1 %v3072_v13, %s3768_s8  ;;  %v1675_v13 = vshrl.u32 %v3120_v54, 16 }
  0x8a   : > { %1010 = vrot.lane.b32.xlu0 %v3071_v24, %s3768_s8  ;;  %v1663_v24 = vshrl.u32 %v3119_v58, 16  ;;  %v1680_v15 = vor.u32 %v1679_v60, %v1675_v13  ;;  %v865_v60 = vrot.slane %v3058_v2, 1  ;;  %v4330_v2 = vcombine.low %v2969_v52, %v4315_v53  ;;  %v3010_v52 = vld [vmem:[%s3869_s7 + $0x84] sm:$0xe] }
  0x8c   : > { %1284 = vrot.lane.b32.xlu1 %v1173_v4, %s3772_s12  ;;  %v1668_v40 = vor.u32 %v1667_v25, %v1663_v24  ;;  %v1685_v44 = vsel %vm564_vm1, %v1680_v15, %v1684_v31  ;;  %v679_v4 = vor.u32 %v678_v51, %v674_v50  ;;  %v4285_v24 = vld [vmem:[%s3869_s7 + $0x80] ss:$0 sps:$4 sm:$0x11]   ;;  %v4292_v15 = vld [vmem:[%s3869_s7 + $0x74] ss:$0 sps:$4 sm:$0x11]   ;;  %v867_v36 = vsel %vm837_vm0, %v865_v60, %v866_v14 }
  0x8d   : > { %v1194_v38 = vshll.u32 %v4285_v24, 16  ;;  %v1182_v49 = vshll.u32 %v4292_v15, 16  ;;  %v4347_v60 = vld [vmem:[%s3869_s7 + $0x80] ss:$0 sps:$4 sm:$0x11]  }
  0x8e   : > { %1282 = vrot.lane.b32.xlu0 %v1161_v10, %s3772_s12  ;;  %v1673_v57 = vsel %vm564_vm1, %v1668_v40, %v1672_v41  ;;  %v1882_v10 = vsel %vm837_vm0, %v1880_v48, %v1881_v55  ;;  %v4303_v40 = vld [vmem:[%s3869_s7 + $0x88] sm:$0xf] }
  0x8f   : > { %v1196_v55 = vrot.slane %v1194_v38, 1 }
  0x90   : > { %1412 = vrot.lane.b32.xlu1 %v1373_v19, %s3769_s9  ;;  %v4228_v27 = vpop.permute.xlu1 %1000  ;;  %v862_v19 = vrot.slane %v3057_v3, 1  ;;  %v256_v3 = vld [vmem:[%s3869_s7 + $0x78] sm:$0xf] }
  0x91   : > { %v4230_v28 = vpop.permute.xlu0 %998 }
  0x92   : > { %1410 = vrot.lane.b32.xlu0 %v1370_v20, %s3769_s9  ;;  %v684_v20 = vsel %vm564_vm1, %v679_v4, %v683_v1  ;;  %v1378_v1 = vrot.slane %v4285_v24, 1  ;;  %v258_v24 = vld [vmem:[%s3869_s7 + $0x84] sm:$0xf] }
  0x94   : > { %1524 = vrot.lane.b32.xlu1 %v3120_v54, %s3773_s13  ;;  %v3152_v54 = vcombine.low %v3008_v42, %v4180_v46  ;;  %v672_v46 = vsel %vm564_vm1, %v667_v37, %v671_v45  ;;  %v864_v42 = vsel %vm837_vm0, %v862_v19, %v863_v17  ;;  %v1179_v45 = vrot.slane %v1177_v11, 1 }
  0x95   : > { %v4245_v43 = vpop.permute.xlu0 %1398 }
  0x96   : > { %1522 = vrot.lane.b32.xlu0 %v3119_v58, %s3773_s13  ;;  %v4251_v56 = vpop.permute.xlu1 %886  ;;  %v4257_v58 = vld [vmem:[%s3869_s7 + $0x7c] sm:$0xf]  ;;  %v1883_v12 = vrot.slane %v3152_v54, 1  ;;  %v3105_v54 = vcombine.low %v2945_v33, %v4261_v0  ;;  %v1184_v0 = vrot.slane %v1182_v49, 1 }
  0x97   : > { %v4269_v6 = vcombine.low %v2907_v61, %v4257_v58  ;;  %v3106_v51 = vcombine.low %v2946_v18, %v4257_v58 }
  0x98   : > { %1796 = vrot.lane.b32.xlu1 %v1685_v44, %s3774_s14  ;;  %v1885_v26 = vsel %vm837_vm0, %v1883_v12, %v1884_v9  ;;  %v1175_v44 = vshrl.u32 %v4276_v62, 16  ;;  %v1374_v12 = vrot.slane %v3105_v54, 1  ;;  %v1375_v9 = vrot.slane %v4292_v15, 1 }
  0x99   : > { %v1189_v5 = vshll.u32 %v4269_v6, 16  ;;  %v1187_v34 = vshrl.u32 %v4269_v6, 16  ;;  %v1377_v4 = vrot.slane %v3106_v51, 1 }
  0x9a   : > { %1794 = vrot.lane.b32.xlu0 %v1673_v57, %s3774_s14  ;;  %v4271_v7 = vpop.permute.xlu1 %888  ;;  %v4320_v57 = vcombine.low %v2971_v39, %v4303_v40  ;;  %v1180_v63 = vor.u32 %v1179_v45, %v1175_v44  ;;  %v1376_v15 = vsel %vm837_vm0, %v1374_v12, %v1375_v9 }
  0x9b   : > { %v1191_v32 = vrot.slane %v1189_v5, 1  ;;  %v1689_v5 = vshll.u32 %v4330_v2, 16  ;;  %v1379_v11 = vsel %vm837_vm0, %v1377_v4, %v1378_v1 }
  0x9c   : > { %v758_v13 = vpop.permute.xlu0 %757  ;;  %773 = vrot.lane.b32.xlu1 %v672_v46, %s3771_s11  ;;  %v4334_v46 = vld [vmem:[%s3869_s7 + $0x7c] sm:$0xf] }
  0x9d   : > { %v1944_v37 = vsel %vm1942_vm3, %v3897_v23, %v758_v13  ;;  %v1192_v23 = vor.u32 %v1191_v32, %v1187_v34  ;;  %v1701_v13 = vshll.u32 %v4320_v57, 16  ;;  %v4355_v19 = vcombine.low %v256_v3, %v4334_v46  ;;  %v4372_v34 = vld [vmem:[%s3869_s7 + $0x80] ss:$0 sps:$4 sm:$0x11]  }
  0x9e   : > { %1922 = vrot.lane.b32.xlu0 %v1882_v10, %s3775_s24  ;;  %v4287_v25 = vpop.permute.xlu1 %1400  ;;  %v1977_v61 = vsel %vm1975_vm4, %v1944_v37, %v4251_v56  ;;  %v4338_v10 = vld [vmem:[%s3869_s7 + $0x8c] ss:$0 sps:$4 sm:$0x11]   ;;  %v1691_v45 = vrot.slane %v1689_v5, 1 }
  0x9f   : > { %v2010_v14 = vsel %vm2008_vm5, %v1977_v61, %v4230_v28  ;;  %v4362_v28 = vld [vmem:[%s3869_s7 + $0x88] sm:$0xf]  ;;  %v1703_v18 = vrot.slane %v1701_v13, 1  ;;  %v1706_v33 = vshll.u32 %v4338_v10, 16  ;;  %v688_v32 = vshll.u32 %v4355_v19, 16 }
  0xa0   : > { %v760_v31 = vpop.permute.xlu0 %759  ;;  %775 = vrot.lane.b32.xlu1 %v684_v20, %s3771_s11  ;;  %v1185_v20 = vsel %vm564_vm1, %v1180_v63, %v1184_v0  ;;  %v4380_v38 = vcombine.low %v258_v24, %v4362_v28  ;;  %v4400_v63 = vld [vmem:[%s3869_s7 + $0x8c] ss:$0 sps:$4 sm:$0x11]   ;;  %v3154_v13 = vcombine.low %v3010_v52, %v4303_v40  ;;  %v1887_v24 = vrot.slane %v4347_v60, 1  ;;  %v2948_v52 = vld [vmem:[%s3869_s7 + $0x90] sm:$0xe] }
  0xa1   : > { %v1946_v48 = vsel %vm1942_vm3, %v3902_v29, %v760_v31  ;;  %v1699_v31 = vshrl.u32 %v4320_v57, 16  ;;  %v690_v61 = vrot.slane %v688_v32, 1  ;;  %v705_v40 = vshll.u32 %v4400_v63, 16 }
  0xa2   : > { %1924 = vrot.lane.b32.xlu0 %v1885_v26, %s3775_s24  ;;  %v4305_v41 = vpop.permute.xlu1 %1272  ;;  %v1979_v56 = vsel %vm1975_vm4, %v1946_v48, %v4271_v7  ;;  %v1197_v7 = vsel %vm564_vm1, %v1192_v23, %v1196_v55  ;;  %v1708_v48 = vrot.slane %v1706_v33, 1  ;;  %v686_v55 = vshrl.u32 %v4355_v19, 16 }
  0xa3   : > { %v1704_v54 = vor.u32 %v1703_v18, %v1699_v31  ;;  %v700_v0 = vshll.u32 %v4380_v38, 16  ;;  %v4431_v31 = vld [vmem:[%s3869_s7 + $0x88] sm:$0xf]  ;;  %v1889_v18 = vrot.slane %v3154_v13, 1 }
  0xa4   : > { %v1271_v50 = vpop.permute.xlu0 %1270  ;;  %904 = vrot.lane.b32.xlu1 %v867_v36, %s3770_s10  ;;  %v1687_v36 = vshrl.u32 %v4330_v2, 16 }
  0xa6   : > { %902 = vrot.lane.b32.xlu0 %v864_v42, %s3770_s10  ;;  %v4327_v58 = vpop.permute.xlu1 %1512 }
  0xa8   : > { %v1511_v29 = vpop.permute.xlu0 %1510  ;;  %1016 = vrot.lane.b32.xlu1 %v4269_v6, %s3768_s8  ;;  %v2043_v6 = vsel %vm2041_vm6, %v2010_v14, %v1271_v50  ;;  %v3009_v50 = vld [vmem:[%s3869_s7 + $0x78] sm:$0xe] }
  0xa9   : > { %v3153_v4 = vcombine.low %v3009_v50, %v4315_v53  ;;  %v691_v53 = vor.u32 %v690_v61, %v686_v55  ;;  %v872_v50 = vrot.slane %v4400_v63, 1  ;;  %v3591_v61 = vld [vmem:[%s3869_s7 + $0x8c] ss:$0 sps:$4 sm:$0x11]  }
  0xaa   : > { %1014 = vrot.lane.b32.xlu0 %v4276_v62, %s3768_s8  ;;  %v1785_v17 = vpop.permute.xlu1 %1784  ;;  %v2012_v62 = vsel %vm2008_vm5, %v1979_v56, %v4228_v27  ;;  %v2076_v27 = vsel %vm2074_vm7, %v2043_v6, %v4245_v43  ;;  %v1694_v43 = vshll.u32 %v4347_v60, 16  ;;  %v702_v6 = vrot.slane %v700_v0, 1 }
  0xab   : > { %v2045_v39 = vsel %vm2041_vm6, %v2012_v62, %v4305_v41  ;;  %v2109_v42 = vsel %vm2107_vm8, %v2076_v27, %v1511_v29  ;;  %v693_v41 = vshll.u32 %v4372_v34, 16  ;;  %v1886_v5 = vrot.slane %v3153_v4, 1  ;;  %v2911_v62 = vld [vmem:[%s3869_s7 + $0x90] sm:$0xf]  ;;  %v2975_v4 = vld [vmem:[%s3869_s7 + $0x9c] sm:$0xf] }
  0xac   : > { %v1783_v26 = vpop.permute.xlu0 %1782  ;;  %1288 = vrot.lane.b32.xlu1 %v1197_v7, %s3772_s12  ;;  %v2078_v23 = vsel %vm2074_vm7, %v2045_v39, %v4287_v25  ;;  %v1692_v25 = vor.u32 %v1691_v45, %v1687_v36  ;;  %v1696_v1 = vrot.slane %v1694_v43, 1  ;;  %v698_v7 = vshrl.u32 %v4380_v38, 16 }
  0xad   : > { %v2142_v49 = vsel %vm2140_vm9, %v2109_v42, %v1783_v26  ;;  %v2111_v3 = vsel %vm2107_vm8, %v2078_v23, %v4327_v58  ;;  %v1709_v58 = vsel %vm564_vm1, %v1704_v54, %v1708_v48  ;;  %v695_v14 = vrot.slane %v693_v41, 1  ;;  %v2912_v26 = vld [vmem:[%s3869_s7 + $0x94] sm:$0xf]  ;;  %v3590_v54 = vld [vmem:[%s3869_s7 + $0x98] ss:$0 sps:$4 sm:$0x11]  }
  0xae   : > { %1286 = vrot.lane.b32.xlu0 %v1185_v20, %s3772_s12  ;;  %v4385_v44 = vpop.permute.xlu1 %761  ;;  %v2144_v56 = vsel %vm2140_vm9, %v2111_v3, %v1785_v17  ;;  %v295_v17 = vld [vmem:[%s3869_s7 + $0x84] sm:$0xe]  ;;  %v703_v36 = vor.u32 %v702_v6, %v698_v7  ;;  %v707_v60 = vrot.slane %v705_v40, 1  ;;  %v3076_v32 = vcombine.low %v2911_v62, %v2912_v26  ;;  %v2973_v40 = vld [vmem:[%s3869_s7 + $0x90] sm:$0xf] }
  0xaf   : > { %v3060_v33 = vcombine.low %v295_v17, %v4362_v28  ;;  %v696_v27 = vsel %vm564_vm1, %v691_v53, %v695_v14  ;;  %v1888_v42 = vsel %vm837_vm0, %v1886_v5, %v1887_v24  ;;  %v1890_v45 = vrot.slane %v4338_v10, 1  ;;  %v2947_v3 = vld [vmem:[%s3869_s7 + $0x84] sm:$0xe]  ;;  %v4470_v17 = vld [vmem:[%s3869_s7 + $0x94] sm:$0xf] }
  0xb0   : > { %v1911_v37 = vpop.permute.xlu0 %1910  ;;  %1416 = vrot.lane.b32.xlu1 %v1379_v11, %s3769_s9  ;;  %v294_v11 = vld [vmem:[%s3869_s7 + $0x78] sm:$0xe]  ;;  %v1213_v10 = vshll.u32 %v3076_v32, 16  ;;  %v869_v23 = vrot.slane %v4372_v34, 1  ;;  %v1206_v53 = vshll.u32 %v3591_v61, 16  ;;  %v3107_v6 = vcombine.low %v2947_v3, %v4431_v31 }
  0xb1   : > { %v2175_v51 = vsel %vm2173_vm10, %v2142_v49, %v1911_v37  ;;  %v3059_v43 = vcombine.low %v294_v11, %v4334_v46  ;;  %v871_v37 = vrot.slane %v3060_v33, 1  ;;  %v1891_v48 = vsel %vm837_vm0, %v1889_v18, %v1890_v45  ;;  %v260_v18 = vld [vmem:[%s3869_s7 + $0x90] sm:$0xf]  ;;  %v4484_v33 = vld [vmem:[%s3869_s7 + $0x94] sm:$0xf] }
  0xb2   : > { %1414 = vrot.lane.b32.xlu0 %v1376_v15, %s3769_s9  ;;  %3372 = vmatprep.mubr.msk.bf16.mxu0 %vm2226_vm11, %v2175_v51  ;;  %v4405_v29 = vpop.permute.xlu1 %763  ;;  %v2909_v15 = vld [vmem:[%s3869_s7 + $0x84] sm:$0xf]  ;;  %v708_v51 = vsel %vm564_vm1, %v703_v36, %v707_v60  ;;  %v1208_v11 = vrot.slane %v1206_v53, 1  ;;  %v1384_v36 = vrot.slane %v3590_v54, 1  ;;  %v1380_v60 = vrot.slane %v3107_v6, 1 }
  0xb3   : > { %v3075_v28 = vcombine.low %v2909_v15, %v4431_v31  ;;  %v868_v41 = vrot.slane %v3059_v43, 1  ;;  %v873_v63 = vsel %vm837_vm0, %v871_v37, %v872_v50  ;;  %v4480_v31 = vcombine.low %v2973_v40, %v4470_v17  ;;  %v4487_v45 = vld [vmem:[%s3869_s7 + $0xa4] ss:$0 sps:$4 sm:$0x11]  }
  0xb4   : > { %v1913_v12 = vpop.permute.xlu0 %1912  ;;  %1528 = vrot.lane.b32.xlu1 %v4320_v57, %s3773_s13  ;;  %v1697_v57 = vsel %vm564_vm1, %v1692_v25, %v1696_v1  ;;  %v3108_v25 = vcombine.low %v2948_v52, %v2912_v26  ;;  %v1211_v1 = vshrl.u32 %v3076_v32, 16  ;;  %v1948_v37 = vsel %vm1942_vm3, %v3942_v16, %v4385_v44  ;;  %v4508_v16 = vld [vmem:[%s3869_s7 + $0xa0] sm:$0xf] }
  0xb5   : > { %v2177_v9 = vsel %vm2173_vm10, %v2144_v56, %v1913_v12  ;;  %v1201_v55 = vshll.u32 %v3075_v28, 16  ;;  %v1215_v56 = vrot.slane %v1213_v10, 1  ;;  %v1218_v12 = vshll.u32 %v3590_v54, 16 }
  0xb6   : > { %1526 = vrot.lane.b32.xlu0 %v4330_v2, %s3773_s13  ;;  %3373 = vmatmul.mubr.msk.bf16.vlgmr.msra.gmra.mxu0 %vm2226_vm11, %v2177_v9  ;;  %v4420_v20 = vpop.permute.xlu1 %892  ;;  %v4462_v9 = vld [vmem:[%s3869_s7 + $0xa0] sm:$0xf]  ;;  %v870_v13 = vsel %vm837_vm0, %v868_v41, %v869_v23  ;;  %v1383_v15 = vrot.slane %v3108_v25, 1  ;;  %v4500_v52 = vcombine.low %v260_v18, %v4484_v33  ;;  %v262_v41 = vld [vmem:[%s3869_s7 + $0x9c] sm:$0xf]  ;;  %v1711_v25 = vshrl.u32 %v4480_v31, 16 }
  0xb7   : > { %v1203_v14 = vrot.slane %v1201_v55, 1  ;;  %v1216_v5 = vor.u32 %v1215_v56, %v1211_v1  ;;  %v1220_v24 = vrot.slane %v1218_v12, 1  ;;  %v4521_v1 = vld [vmem:[%s3869_s7 + $0x98] ss:$0 sps:$4 sm:$0x11]  }
  0xb8   : > { %v4426_v2 = vpop.permute.xlu0 %890  ;;  %1800 = vrot.lane.b32.xlu1 %v1709_v58, %s3774_s14  ;;  %v1199_v58 = vshrl.u32 %v3075_v28, 16  ;;  %v1385_v23 = vsel %vm837_vm0, %v1383_v15, %v1384_v36  ;;  %v712_v12 = vshll.u32 %v4500_v52, 16  ;;  %v4553_v18 = vld [vmem:[%s3869_s7 + $0xa4] ss:$0 sps:$4 sm:$0x11]  }
  0xb9   : > { %v1221_v50 = vsel %vm564_vm1, %v1216_v5, %v1220_v24  ;;  %v1981_v10 = vsel %vm1975_vm4, %v1948_v37, %v4426_v2  ;;  %v1730_v2 = vshll.u32 %v4487_v45, 16  ;;  %v3012_v37 = vld [vmem:[%s3869_s7 + $0x9c] sm:$0xe] }
  0xba   : > { %1798 = vrot.lane.b32.xlu0 %v1697_v57, %s3774_s14  ;;  %v4437_v39 = vpop.permute.xlu1 %1004  ;;  %v4474_v57 = vcombine.low %v2975_v4, %v4462_v9  ;;  %v1204_v26 = vor.u32 %v1203_v14, %v1199_v58  ;;  %v714_v15 = vrot.slane %v712_v12, 1 }
  0xbb   : > { %v1732_v5 = vrot.slane %v1730_v2, 1  ;;  %v4579_v2 = vld [vmem:[%s3869_s7 + $0xac] sm:$0xf] }
  0xbc   : > { %v4443_v49 = vpop.permute.xlu0 %1002  ;;  %777 = vrot.lane.b32.xlu1 %v696_v27, %s3771_s11  ;;  %v1725_v43 = vshll.u32 %v4474_v57, 16  ;;  %v1209_v54 = vsel %vm564_vm1, %v1204_v26, %v1208_v11  ;;  %v1723_v3 = vshrl.u32 %v4474_v57, 16  ;;  %v717_v11 = vshll.u32 %v4521_v1, 16 }
  0xbd   : > { %v2014_v44 = vsel %vm2008_vm5, %v1981_v10, %v4443_v49  ;;  %v1950_v49 = vsel %vm1942_vm3, %v3953_v30, %v4405_v29 }
  0xbe   : > { %1926 = vrot.lane.b32.xlu0 %v1888_v42, %s3775_s24  ;;  %v4451_v46 = vpop.permute.xlu1 %1276  ;;  %v1381_v42 = vrot.slane %v3591_v61, 1  ;;  %v3011_v61 = vld [vmem:[%s3869_s7 + $0x90] sm:$0xe]  ;;  %v1727_v4 = vrot.slane %v1725_v43, 1 }
  0xbf   : > { %v3155_v40 = vcombine.low %v3011_v61, %v4470_v17  ;;  %v710_v17 = vshrl.u32 %v4500_v52, 16 }
  0xc0   : > { %v1275_v0 = vpop.permute.xlu0 %1274  ;;  %779 = vrot.lane.b32.xlu1 %v708_v51, %s3771_s11  ;;  %v4497_v51 = vld [vmem:[%s3869_s7 + $0x98] ss:$0 sps:$4 sm:$0x11]   ;;  %v1382_v55 = vsel %vm837_vm0, %v1380_v60, %v1381_v42  ;;  %v1728_v26 = vor.u32 %v1727_v4, %v1723_v3  ;;  %v2913_v3 = vld [vmem:[%s3869_s7 + $0x9c] sm:$0xf] }
  0xc1   : > { %v1718_v6 = vshll.u32 %v4497_v51, 16  ;;  %v4586_v4 = vld [vmem:[%s3869_s7 + $0xa0] sm:$0xf] }
  0xc2   : > { %1928 = vrot.lane.b32.xlu0 %v1891_v48, %s3775_s24  ;;  %v4464_v34 = vpop.permute.xlu1 %1404  ;;  %v1713_v48 = vshll.u32 %v4480_v31, 16 }
  0xc3   : > { %v1720_v42 = vrot.slane %v1718_v6, 1  ;;  %v1896_v6 = vrot.slane %v4487_v45, 1 }
  0xc4   : > { %v1403_v7 = vpop.permute.xlu0 %1402  ;;  %908 = vrot.lane.b32.xlu1 %v873_v63, %s3770_s10  ;;  %v2047_v63 = vsel %vm2041_vm6, %v2014_v44, %v1275_v0  ;;  %v4530_v0 = vcombine.low %v262_v41, %v4508_v16  ;;  %v1715_v53 = vrot.slane %v1713_v48, 1  ;;  %v1893_v48 = vrot.slane %v4497_v51, 1  ;;  %v2915_v51 = vld [vmem:[%s3869_s7 + $0xa8] sm:$0xf] }
  0xc5   : > { %v2080_v56 = vsel %vm2074_vm7, %v2047_v63, %v1403_v7 }
  0xc6   : > { %906 = vrot.lane.b32.xlu0 %v870_v13, %s3770_s10  ;;  %v4477_v62 = vpop.permute.xlu1 %1516  ;;  %v1983_v13 = vsel %vm1975_vm4, %v1950_v49, %v4420_v20  ;;  %v1716_v60 = vor.u32 %v1715_v53, %v1711_v25  ;;  %v722_v41 = vshrl.u32 %v4530_v0, 16 }
  0xc7   : > { %v2016_v30 = vsel %vm2008_vm5, %v1983_v13, %v4437_v39  ;;  %v3078_v13 = vcombine.low %v2915_v51, %v4579_v2 }
  0xc8   : > { %v1515_v27 = vpop.permute.xlu0 %1514  ;;  %1020 = vrot.lane.b32.xlu1 %v3076_v32, %s3768_s8  ;;  %v2049_v20 = vsel %vm2041_vm6, %v2016_v30, %v4451_v46  ;;  %v724_v46 = vshll.u32 %v4530_v0, 16  ;;  %v1721_v61 = vsel %vm564_vm1, %v1716_v60, %v1720_v42 }
  0xc9   : > { %v2113_v58 = vsel %vm2107_vm8, %v2080_v56, %v1515_v27  ;;  %v2082_v39 = vsel %vm2074_vm7, %v2049_v20, %v4464_v34  ;;  %v4606_v20 = vld [vmem:[%s3869_s7 + $0xb0] ss:$0 sps:$4 sm:$0x11]   ;;  %v1237_v45 = vshll.u32 %v3078_v13, 16 }
  0xca   : > { %1018 = vrot.lane.b32.xlu0 %v3075_v28, %s3768_s8  ;;  %v1789_v32 = vpop.permute.xlu1 %1788  ;;  %v2115_v27 = vsel %vm2107_vm8, %v2082_v39, %v4477_v62  ;;  %v719_v62 = vrot.slane %v717_v11, 1  ;;  %v726_v44 = vrot.slane %v724_v46, 1  ;;  %v875_v11 = vrot.slane %v4521_v1, 1  ;;  %v3607_v39 = vld [vmem:[%s3869_s7 + $0xa4] ss:$0 sps:$4 sm:$0x11]  }
  0xcb   : > { %v2148_v34 = vsel %vm2140_vm9, %v2115_v27, %v1789_v32  ;;  %v715_v32 = vor.u32 %v714_v15, %v710_v17  ;;  %v1235_v46 = vshrl.u32 %v3078_v13, 16  ;;  %v2950_v27 = vld [vmem:[%s3869_s7 + $0xa8] sm:$0xe]  ;;  %v1239_v42 = vrot.slane %v1237_v45, 1 }
  0xcc   : > { %v1787_v28 = vpop.permute.xlu0 %1786  ;;  %1292 = vrot.lane.b32.xlu1 %v1221_v50, %s3772_s12  ;;  %v1892_v50 = vrot.slane %v3155_v40, 1  ;;  %v727_v56 = vor.u32 %v726_v44, %v722_v41  ;;  %v2977_v44 = vld [vmem:[%s3869_s7 + $0xa8] sm:$0xf] }
  0xcd   : > { %v2146_v29 = vsel %vm2140_vm9, %v2113_v58, %v1787_v28  ;;  %v729_v28 = vshll.u32 %v4553_v18, 16 }
  0xce   : > { %1290 = vrot.lane.b32.xlu0 %v1209_v54, %s3772_s12  ;;  %v4535_v14 = vpop.permute.xlu1 %765  ;;  %v1733_v54 = vsel %vm564_vm1, %v1728_v26, %v1732_v5  ;;  %v1894_v25 = vsel %vm837_vm0, %v1892_v50, %v1893_v48  ;;  %v878_v5 = vrot.slane %v4553_v18, 1  ;;  %v2949_v18 = vld [vmem:[%s3869_s7 + $0x9c] sm:$0xe] }
  0xcf   : > { %v731_v12 = vrot.slane %v729_v28, 1  ;;  %v3109_v41 = vcombine.low %v2949_v18, %v4586_v4  ;;  %v4630_v28 = vld [vmem:[%s3869_s7 + $0xac] sm:$0xf] }
  0xd0   : > { %v1915_v7 = vpop.permute.xlu0 %1914  ;;  %1420 = vrot.lane.b32.xlu1 %v1385_v23, %s3769_s9  ;;  %v3156_v23 = vcombine.low %v3012_v37, %v4462_v9  ;;  %v720_v9 = vsel %vm564_vm1, %v715_v32, %v719_v62  ;;  %v4621_v37 = vld [vmem:[%s3869_s7 + $0xb8] sm:$0xf]  ;;  %v1230_v62 = vshll.u32 %v3607_v39, 16  ;;  %v3110_v32 = vcombine.low %v2950_v27, %v4579_v2 }
  0xd1   : > { %v2179_v24 = vsel %vm2173_vm10, %v2146_v29, %v1915_v7  ;;  %v3077_v29 = vcombine.low %v2913_v3, %v4586_v4  ;;  %v732_v7 = vsel %vm564_vm1, %v727_v56, %v731_v12  ;;  %v1390_v3 = vrot.slane %v4606_v20, 1 }
  0xd2   : > { %1418 = vrot.lane.b32.xlu0 %v1382_v55, %s3769_s9  ;;  %3376 = vmatprep.mubr.msk.bf16.mxu0 %vm2226_vm11, %v2179_v24  ;;  %v4558_v36 = vpop.permute.xlu1 %767  ;;  %v1895_v53 = vrot.slane %v3156_v23, 1  ;;  %v1240_v23 = vor.u32 %v1239_v42, %v1235_v46  ;;  %v1232_v2 = vrot.slane %v1230_v62, 1  ;;  %v4641_v4 = vcombine.low %v2977_v44, %v4630_v28 }
  0xd3   : > { %v1225_v17 = vshll.u32 %v3077_v29, 16  ;;  %v1389_v56 = vrot.slane %v3110_v32, 1  ;;  %v1386_v12 = vrot.slane %v3109_v41, 1 }
  0xd4   : > { %v1917_v43 = vpop.permute.xlu0 %1916  ;;  %1532 = vrot.lane.b32.xlu1 %v4474_v57, %s3773_s13  ;;  %v297_v57 = vld [vmem:[%s3869_s7 + $0x9c] sm:$0xe]  ;;  %v1897_v24 = vsel %vm837_vm0, %v1895_v53, %v1896_v6  ;;  %v1387_v53 = vrot.slane %v3607_v39, 1  ;;  %v4648_v6 = vld [vmem:[%s3869_s7 + $0xbc] ss:$0 sps:$4 sm:$0x11]  }
  0xd5   : > { %v2181_v10 = vsel %vm2173_vm10, %v2148_v34, %v1917_v43  ;;  %v3062_v49 = vcombine.low %v297_v57, %v4508_v16  ;;  %v1242_v34 = vshll.u32 %v4606_v20, 16  ;;  %v2979_v43 = vld [vmem:[%s3869_s7 + $0xb4] sm:$0xf]  ;;  %v1391_v39 = vsel %vm837_vm0, %v1389_v56, %v1390_v3  ;;  %v4709_v3 = vld [vmem:[%s3869_s7 + $0xbc] ss:$0 sps:$4 sm:$0x11]  }
  0xd6   : > { %1530 = vrot.lane.b32.xlu0 %v4480_v31, %s3773_s13  ;;  %3377 = vmatmul.mubr.msk.bf16.gmra.mxu0 %vm2226_vm11, %v2181_v10  ;;  %v4574_v55 = vpop.permute.xlu1 %896  ;;  %v296_v31 = vld [vmem:[%s3869_s7 + $0x90] sm:$0xe]  ;;  %v1223_v10 = vshrl.u32 %v3077_v29, 16  ;;  %v4634_v57 = vcombine.low %v2979_v43, %v4621_v37  ;;  %v1754_v46 = vshll.u32 %v4648_v6, 16  ;;  %v1735_v42 = vshrl.u32 %v4641_v4, 16 }
  0xd7   : > { %v3061_v30 = vcombine.low %v296_v31, %v4484_v33  ;;  %v877_v40 = vrot.slane %v3062_v49, 1  ;;  %v4645_v49 = vld [vmem:[%s3869_s7 + $0xac] sm:$0xf] }
  0xd8   : > { %v4581_v63 = vpop.permute.xlu0 %894  ;;  %1804 = vrot.lane.b32.xlu1 %v1733_v54, %s3774_s14  ;;  %v1227_v54 = vrot.slane %v1225_v17, 1  ;;  %v1388_v17 = vsel %vm837_vm0, %v1386_v12, %v1387_v53  ;;  %v1747_v18 = vshrl.u32 %v4634_v57, 16  ;;  %v1756_v44 = vrot.slane %v1754_v46, 1  ;;  %v2919_v46 = vld [vmem:[%s3869_s7 + $0xc0] sm:$0xf] }
  0xd9   : > { %v874_v26 = vrot.slane %v3061_v30, 1  ;;  %v879_v60 = vsel %vm837_vm0, %v877_v40, %v878_v5  ;;  %v1749_v30 = vshll.u32 %v4634_v57, 16  ;;  %v4658_v5 = vld [vmem:[%s3869_s7 + $0xb0] ss:$0 sps:$4 sm:$0x11]  }
  0xda   : > { %1802 = vrot.lane.b32.xlu0 %v1721_v61, %s3774_s14  ;;  %v4594_v58 = vpop.permute.xlu1 %1008  ;;  %v1244_v61 = vrot.slane %v1242_v34, 1  ;;  %v1228_v31 = vor.u32 %v1227_v54, %v1223_v10 }
  0xdb   : > { %v876_v50 = vsel %vm837_vm0, %v874_v26, %v875_v11  ;;  %v1737_v26 = vshll.u32 %v4641_v4, 16  ;;  %v266_v11 = vld [vmem:[%s3869_s7 + $0xb4] sm:$0xf] }
  0xdc   : > { %v4599_v16 = vpop.permute.xlu0 %1006  ;;  %781 = vrot.lane.b32.xlu1 %v720_v9, %s3771_s11  ;;  %v1245_v40 = vsel %vm564_vm1, %v1240_v23, %v1244_v61 }
  0xdd   : > { %v1739_v32 = vrot.slane %v1737_v26, 1  ;;  %v753_v26 = vshll.u32 %v4709_v3, 16 }
  0xde   : > { %1930 = vrot.lane.b32.xlu0 %v1894_v25, %s3775_s24  ;;  %v4608_v33 = vpop.permute.xlu1 %1280  ;;  %v264_v25 = vld [vmem:[%s3869_s7 + $0xa8] sm:$0xf] }
  0xdf   : > { %v4661_v20 = vcombine.low %v264_v25, %v4645_v49 }
  0xe0   : > { %v1279_v15 = vpop.permute.xlu0 %1278  ;;  %783 = vrot.lane.b32.xlu1 %v732_v7, %s3771_s11  ;;  %v1952_v7 = vsel %vm1942_vm3, %v4016_v47, %v4535_v14  ;;  %v4669_v47 = vld [vmem:[%s3869_s7 + $0xb8] sm:$0xf] }
  0xe1   : > { %v1985_v45 = vsel %vm1975_vm4, %v1952_v7, %v4581_v63  ;;  %v4677_v63 = vld [vmem:[%s3869_s7 + $0xb0] ss:$0 sps:$4 sm:$0x11]   ;;  %v736_v43 = vshll.u32 %v4661_v20, 16  ;;  %v734_v25 = vshrl.u32 %v4661_v20, 16 }
  0xe2   : > { %1932 = vrot.lane.b32.xlu0 %v1897_v24, %s3775_s24  ;;  %v4623_v1 = vpop.permute.xlu1 %1408  ;;  %v1233_v24 = vsel %vm564_vm1, %v1228_v31, %v1232_v2  ;;  %v2018_v14 = vsel %vm2008_vm5, %v1985_v45, %v4599_v16  ;;  %v1954_v16 = vsel %vm1942_vm3, %v4030_v59, %v4558_v36  ;;  %v1742_v59 = vshll.u32 %v4658_v5, 16 }
  0xe3   : > { %v2051_v27 = vsel %vm2041_vm6, %v2018_v14, %v1279_v15  ;;  %v4691_v15 = vcombine.low %v266_v11, %v4669_v47  ;;  %v1987_v10 = vsel %vm1975_vm4, %v1954_v16, %v4574_v55  ;;  %v741_v23 = vshll.u32 %v4677_v63, 16 }
  0xe4   : > { %v1407_v48 = vpop.permute.xlu0 %1406  ;;  %912 = vrot.lane.b32.xlu1 %v879_v60, %s3770_s10  ;;  %v1751_v60 = vrot.slane %v1749_v30, 1  ;;  %v2020_v36 = vsel %vm2008_vm5, %v1987_v10, %v4594_v58  ;;  %v1744_v53 = vrot.slane %v1742_v59, 1  ;;  %v1902_v59 = vrot.slane %v4648_v6, 1 }
  0xe5   : > { %v2084_v34 = vsel %vm2074_vm7, %v2051_v27, %v1407_v48  ;;  %v2053_v61 = vsel %vm2041_vm6, %v2020_v36, %v4608_v33  ;;  %v738_v33 = vrot.slane %v736_v43, 1  ;;  %v746_v14 = vshrl.u32 %v4691_v15, 16  ;;  %v4740_v27 = vld [vmem:[%s3869_s7 + $0xc4] sm:$0xf] }
  0xe6   : > { %910 = vrot.lane.b32.xlu0 %v876_v50, %s3770_s10  ;;  %v4637_v51 = vpop.permute.xlu1 %1520  ;;  %v3013_v50 = vld [vmem:[%s3869_s7 + $0xa8] sm:$0xe]  ;;  %v1752_v31 = vor.u32 %v1751_v60, %v1747_v18  ;;  %v2086_v58 = vsel %vm2074_vm7, %v2053_v61, %v4623_v1  ;;  %v743_v1 = vrot.slane %v741_v23, 1  ;;  %v2917_v60 = vld [vmem:[%s3869_s7 + $0xb4] sm:$0xf]  ;;  %v3080_v10 = vcombine.low %v2919_v46, %v4740_v27 }
  0xe7   : > { %v3157_v2 = vcombine.low %v3013_v50, %v4630_v28  ;;  %v2119_v56 = vsel %vm2107_vm8, %v2086_v58, %v4637_v51  ;;  %v1740_v28 = vor.u32 %v1739_v32, %v1735_v42  ;;  %v1899_v51 = vrot.slane %v4658_v5, 1  ;;  %v4747_v42 = vld [vmem:[%s3869_s7 + $0xb8] sm:$0xf]  ;;  %v3624_v61 = vld [vmem:[%s3869_s7 + $0xc8] ss:$0 sps:$4 sm:$0x11]  }
  0xe8   : > { %v1519_v9 = vpop.permute.xlu0 %1518  ;;  %1024 = vrot.lane.b32.xlu1 %v3078_v13, %s3768_s8  ;;  %v739_v11 = vor.u32 %v738_v33, %v734_v25  ;;  %v884_v23 = vrot.slane %v4709_v3, 1  ;;  %v3625_v58 = vld [vmem:[%s3869_s7 + $0xbc] ss:$0 sps:$4 sm:$0x11]   ;;  %v2951_v3 = vld [vmem:[%s3869_s7 + $0xb4] sm:$0xe] }
  0xe9   : > { %v2117_v54 = vsel %vm2107_vm8, %v2084_v34, %v1519_v9  ;;  %v748_v9 = vshll.u32 %v4691_v15, 16  ;;  %v755_v34 = vrot.slane %v753_v26, 1 }
  0xea   : > { %1022 = vrot.lane.b32.xlu0 %v3077_v29, %s3768_s8  ;;  %v1793_v13 = vpop.permute.xlu1 %1792 }
  0xeb   : > { %v2152_v30 = vsel %vm2140_vm9, %v2119_v56, %v1793_v13  ;;  %v1757_v13 = vsel %vm564_vm1, %v1752_v31, %v1756_v44 }
  0xec   : > { %v1791_v29 = vpop.permute.xlu0 %1790  ;;  %1296 = vrot.lane.b32.xlu1 %v1245_v40, %s3772_s12  ;;  %v3014_v40 = vld [vmem:[%s3869_s7 + $0xb4] sm:$0xe] }
  0xed   : > { %v2150_v48 = vsel %vm2140_vm9, %v2117_v54, %v1791_v29  ;;  %v750_v29 = vrot.slane %v748_v9, 1  ;;  %v3158_v5 = vcombine.low %v3014_v40, %v4621_v37  ;;  %v744_v37 = vsel %vm564_vm1, %v739_v11, %v743_v1  ;;  %v2952_v9 = vld [vmem:[%s3869_s7 + $0xc0] sm:$0xe]  ;;  %v4784_v11 = vld [vmem:[%s3869_s7 + $0xc4] sm:$0xf] }
  0xee   : > { %1294 = vrot.lane.b32.xlu0 %v1233_v24, %s3772_s12  ;;  %v4696_v62 = vpop.permute.xlu1 %769  ;;  %v1898_v24 = vrot.slane %v3157_v2, 1  ;;  %v881_v2 = vrot.slane %v4677_v63, 1 }
  0xef   : > { %v751_v43 = vor.u32 %v750_v29, %v746_v14  ;;  %v1901_v32 = vrot.slane %v3158_v5, 1  ;;  %v3112_v14 = vcombine.low %v2952_v9, %v4740_v27  ;;  %v3111_v29 = vcombine.low %v2951_v3, %v4747_v42 }
  0xf0   : > { %v1919_v41 = vpop.permute.xlu0 %1918  ;;  %1424 = vrot.lane.b32.xlu1 %v1391_v39, %s3769_s9  ;;  %v1745_v39 = vsel %vm564_vm1, %v1740_v28, %v1744_v53  ;;  %v1900_v16 = vsel %vm837_vm0, %v1898_v24, %v1899_v51  ;;  %v1259_v28 = vshrl.u32 %v3080_v10, 16  ;;  %v1254_v24 = vshll.u32 %v3625_v58, 16  ;;  %v4780_v51 = vld [vmem:[%s3869_s7 + $0xd0] sm:$0xf] }
  0xf1   : > { %v2183_v55 = vsel %vm2173_vm10, %v2150_v48, %v1919_v41  ;;  %v3079_v48 = vcombine.low %v2917_v60, %v4747_v42  ;;  %v1395_v27 = vrot.slane %v3112_v14, 1  ;;  %v1392_v42 = vrot.slane %v3111_v29, 1 }
  0xf2   : > { %1422 = vrot.lane.b32.xlu0 %v1388_v17, %s3769_s9  ;;  %3380 = vmatprep.mubr.msk.bf16.mxu0 %vm2226_vm11, %v2183_v55  ;;  %v4719_v12 = vpop.permute.xlu1 %771  ;;  %v299_v17 = vld [vmem:[%s3869_s7 + $0xb4] sm:$0xe]  ;;  %v1261_v55 = vshll.u32 %v3080_v10, 16  ;;  %v1256_v60 = vrot.slane %v1254_v24, 1 }
  0xf3   : > { %v3064_v50 = vcombine.low %v299_v17, %v4669_v47  ;;  %v756_v47 = vsel %vm564_vm1, %v751_v43, %v755_v34  ;;  %v1249_v25 = vshll.u32 %v3079_v48, 16  ;;  %v1247_v40 = vshrl.u32 %v3079_v48, 16 }
  0xf4   : > { %v1921_v7 = vpop.permute.xlu0 %1920  ;;  %1536 = vrot.lane.b32.xlu1 %v4634_v57, %s3773_s13  ;;  %v1263_v53 = vrot.slane %v1261_v55, 1  ;;  %v1396_v43 = vrot.slane %v3624_v61, 1 }
  0xf5   : > { %v2185_v45 = vsel %vm2173_vm10, %v2152_v30, %v1921_v7  ;;  %v883_v44 = vrot.slane %v3064_v50, 1  ;;  %v1266_v30 = vshll.u32 %v3624_v61, 16  ;;  %v2983_v7 = vld [vmem:[%s3869_s7 + $0xcc] sm:$0xf]  ;;  %v1393_v50 = vrot.slane %v3625_v58, 1 }
  0xf6   : > { %1534 = vrot.lane.b32.xlu0 %v4641_v4, %s3773_s13  ;;  %3381 = vmatmul.mubr.msk.bf16.gmra.mxu0 %vm2226_vm11, %v2185_v45  ;;  %v4733_v57 = vpop.permute.xlu1 %900  ;;  %v298_v4 = vld [vmem:[%s3869_s7 + $0xa8] sm:$0xe]  ;;  %v1251_v45 = vrot.slane %v1249_v25, 1  ;;  %v3128_v17 = vcombine.low %v2983_v7, %v4780_v51  ;;  %v3015_v7 = vld [vmem:[%s3869_s7 + $0xc0] sm:$0xe] }
  0xf7   : > { %v3063_v36 = vcombine.low %v298_v4, %v4645_v49  ;;  %v1903_v49 = vsel %vm837_vm0, %v1901_v32, %v1902_v59  ;;  %v885_v56 = vsel %vm837_vm0, %v883_v44, %v884_v23  ;;  %v1268_v5 = vrot.slane %v1266_v30, 1 }
  0xf8   : > { %v4742_v18 = vpop.permute.xlu0 %898  ;;  %1808 = vrot.lane.b32.xlu1 %v1757_v13, %s3774_s14  ;;  %v2981_v13 = vld [vmem:[%s3869_s7 + $0xc0] sm:$0xf]  ;;  %v1252_v4 = vor.u32 %v1251_v45, %v1247_v40  ;;  %v1956_v32 = vsel %vm1942_vm3, %v4101_v21, %v4696_v62  ;;  %v1397_v62 = vsel %vm837_vm0, %v1395_v27, %v1396_v43  ;;  %v3159_v29 = vcombine.low %v3015_v7, %v4784_v11 }
  0xf9   : > { %v880_v31 = vrot.slane %v3063_v36, 1  ;;  %v1773_v36 = vshll.u32 %v3128_v17, 16 }
  0xfa   : > { %1806 = vrot.lane.b32.xlu0 %v1745_v39, %s3774_s14  ;;  %v4755_v54 = vpop.permute.xlu1 %1012  ;;  %v1264_v39 = vor.u32 %v1263_v53, %v1259_v28  ;;  %v1257_v23 = vsel %vm564_vm1, %v1252_v4, %v1256_v60  ;;  %v3016_v53 = vld [vmem:[%s3869_s7 + $0xcc] sm:$0xe] }
  0xfb   : > { %v882_v63 = vsel %vm837_vm0, %v880_v31, %v881_v2  ;;  %v1771_v31 = vshrl.u32 %v3128_v17, 16  ;;  %v1958_v2 = vsel %vm1942_vm3, %v4117_v35, %v4719_v12  ;;  %v1775_v58 = vrot.slane %v1773_v36, 1 }
  0xfc   : > { %v1011_v41 = vpop.permute.xlu0 %1010  ;;  %785 = vrot.lane.b32.xlu1 %v744_v37, %s3771_s11  ;;  %v4793_v37 = vld [vmem:[%s3869_s7 + $0xd4] ss:$0 sps:$4 sm:$0x11]   ;;  %v1269_v59 = vsel %vm564_vm1, %v1264_v39, %v1268_v5  ;;  %v3160_v24 = vcombine.low %v3016_v53, %v4780_v51 }
  0xfd   : > { %v1776_v45 = vor.u32 %v1775_v58, %v1771_v31 }
  0xfe   : > { %1934 = vrot.lane.b32.xlu0 %v1900_v16, %s3775_s24  ;;  %v4765_v6 = vpop.permute.xlu1 %1284  ;;  %v3127_v16 = vcombine.low %v2981_v13, %v4784_v11  ;;  %v1907_v4 = vrot.slane %v3160_v24, 1  ;;  %v1904_v11 = vrot.slane %v3159_v29, 1 }
 0x100   : > { %v1283_v33 = vpop.permute.xlu0 %1282  ;;  %787 = vrot.lane.b32.xlu1 %v756_v47, %s3771_s11  ;;  %v1989_v47 = vsel %vm1975_vm4, %v1956_v32, %v4742_v18  ;;  %v1761_v55 = vshll.u32 %v3127_v16, 16  ;;  %v1778_v18 = vshll.u32 %v4793_v37, 16  ;;  %v1759_v25 = vshrl.u32 %v3127_v16, 16 }
 0x101   : > { %v2022_v61 = vsel %vm2008_vm5, %v1989_v47, %v1011_v41 }
 0x102   : > { %1936 = vrot.lane.b32.xlu0 %v1903_v49, %s3775_s24  ;;  %v4776_v1 = vpop.permute.xlu1 %1412  ;;  %v2055_v21 = vsel %vm2041_vm6, %v2022_v61, %v1283_v33  ;;  %v1991_v33 = vsel %vm1975_vm4, %v1958_v2, %v4733_v57 }
 0x103   : > { %v2024_v30 = vsel %vm2008_vm5, %v1991_v33, %v4755_v54  ;;  %v1780_v54 = vrot.slane %v1778_v18, 1 }
 0x104   : > { %v1411_v26 = vpop.permute.xlu0 %1410  ;;  %916 = vrot.lane.b32.xlu1 %v885_v56, %s3770_s10  ;;  %v1763_v56 = vrot.slane %v1761_v55, 1 }
 0x105   : > { %v2088_v41 = vsel %vm2074_vm7, %v2055_v21, %v1411_v26  ;;  %v1781_v51 = vsel %vm564_vm1, %v1776_v45, %v1780_v54 }
 0x106   : > { %914 = vrot.lane.b32.xlu0 %v882_v63, %s3770_s10  ;;  %v1525_v46 = vpop.permute.xlu1 %1524  ;;  %v2057_v63 = vsel %vm2041_vm6, %v2024_v30, %v4765_v6  ;;  %v1764_v14 = vor.u32 %v1763_v56, %v1759_v25  ;;  %s3251_s10 = sshll.u32 %s3758_s18, 11 }
 0x107   : > { %v2090_v57 = vsel %vm2074_vm7, %v2057_v63, %v4776_v1 }
 0x108   : > { %v1523_v34 = vpop.permute.xlu0 %1522  ;;  %1028 = vrot.lane.b32.xlu1 %v3080_v10, %s3768_s8  ;;  %v3631_v10 = vld [vmem:[%s3869_s7 + $0xc8] ss:$0 sps:$4 sm:$0x11]   ;;  %v2123_v26 = vsel %vm2107_vm8, %v2090_v57, %v1525_v46  ;;  %v1908_v46 = vrot.slane %v4793_v37, 1  ;;  %s4908_s7 = sand.u32 1, %s3750_s16  }
 0x109   : > { %v2121_v9 = vsel %vm2107_vm8, %v2088_v41, %v1523_v34  ;;  %v1766_v28 = vshll.u32 %v3631_v10, 16  ;;  %v1905_v27 = vrot.slane %v3631_v10, 1  ;;  %s2693_s29 = scalar_lea.sflag [#allocation3], %s4908_s7 }
 0x10a   : > { %1026 = vrot.lane.b32.xlu0 %v3079_v48, %s3768_s8  ;;  %v1797_v44 = vpop.permute.xlu1 %1796  ;;  %v1394_v48 = vsel %vm837_vm0, %v1392_v42, %v1393_v50  ;;  %s2887_s8 = sshll.u32 %s4908_s7, 7 }
 0x10b   : > { %v1768_v6 = vrot.slane %v1766_v28, 1  ;;  %v2156_v39 = vsel %vm2140_vm9, %v2123_v26, %v1797_v44  ;;  %v1906_v42 = vsel %vm837_vm0, %v1904_v11, %v1905_v27 }
 0x10c   : > { %v1795_v49 = vpop.permute.xlu0 %1794  ;;  %1300 = vrot.lane.b32.xlu1 %v1269_v59, %s3772_s12 }
 0x10d   : > { %v2154_v35 = vsel %vm2140_vm9, %v2121_v9, %v1795_v49  ;;  %v1769_v34 = vsel %vm564_vm1, %v1764_v14, %v1768_v6 }
 0x10e   : > { %1298 = vrot.lane.b32.xlu0 %v1257_v23, %s3772_s12  ;;  %v774_v3 = vpop.permute.xlu1 %773 }
 0x10f   : > { %v1960_v23 = vsel %vm1942_vm3, %v4206_v8, %v774_v3 }
 0x110   : > { %v1923_v12 = vpop.permute.xlu0 %1922  ;;  %1428 = vrot.lane.b32.xlu1 %v1397_v62, %s3769_s9 }
 0x111   : > { %v2187_v40 = vsel %vm2173_vm10, %v2154_v35, %v1923_v12 }
 0x112   : > { %1426 = vrot.lane.b32.xlu0 %v1394_v48, %s3769_s9  ;;  %3384 = vmatprep.mubr.msk.bf16.mxu0 %vm2226_vm11, %v2187_v40  ;;  %v776_v13 = vpop.permute.xlu1 %775  ;;  %s4913_s9 = scalar_lea.vmem [#allocation2], %s2887_s8 }
 0x113   : > { %v1962_v21 = vsel %vm1942_vm3, %v4222_v22, %v776_v13  ;;  %s2716_s12 = sshll.u32 %s4913_s9, 4  ;;  %s4957_s12 = int_to_ptr.vmem [resolvable:$true] %s2716_s12 }
 0x114   : > { %v1925_v5 = vpop.permute.xlu0 %1924  ;;  %1540 = vrot.lane.b32.xlu1 %v3128_v17, %s3773_s13  ;;  %v1909_v17 = vsel %vm837_vm0, %v1907_v4, %v1908_v46  ;;  %s3634_s30 = scalar_lea.vmem %s4957_s12, 2048  ;;  %p3641_p1 = scmp.lt.s32.totalorder %s4957_s12, %s3639_s6 }
 0x115   : > { %v2189_v1 = vsel %vm2173_vm10, %v2156_v39, %v1925_v5  ;;  %p3635_p12 = scmp.ne.s32.totalorder %s4957_s12, %s3634_s30  ;;  %p3642_p2 = scmp.lt.s32.totalorder %s3640_s26, %s3634_s30 }
 0x116   : > { %1538 = vrot.lane.b32.xlu0 %v3127_v16, %s3773_s13  ;;  %3385 = vmatmul.mubr.msk.bf16.gmra.mxu0 %vm2226_vm11, %v2189_v1  ;;  %v905_v60 = vpop.permute.xlu1 %904 }
 0x117   : > { %v1995_v48 = vsel %vm1975_vm4, %v1962_v21, %v905_v60  ;;  %p3636_p13 = pnand %p3635_p12, %p3847_p4  ;;  %p3643_p3 = por %p3642_p2, %p3641_p1 }
 0x118   : > { %v903_v43 = vpop.permute.xlu0 %902  ;;  %1812 = vrot.lane.b32.xlu1 %v1781_v51, %s3774_s14 }
 0x119   : > { %v1993_v10 = vsel %vm1975_vm4, %v1960_v23, %v903_v43  ;;  %p3637_p0 = pneg %p3636_p13 }
 0x11a   : > { %1810 = vrot.lane.b32.xlu0 %v1769_v34, %s3774_s14  ;;  %v1017_v16 = vpop.permute.xlu1 %1016 }
 0x11b   : > { %v2028_v8 = vsel %vm2008_vm5, %v1995_v48, %v1017_v16  ;;  %p3644_p5 = pnand %p3643_p3, %p3637_p0 }
 0x11c   : > { %v1015_v50 = vpop.permute.xlu0 %1014  ;;  %1940 = vrot.lane.b32.xlu1 %v1909_v17, %s3775_s24 }
 0x11d   : > { %v2026_v61 = vsel %vm2008_vm5, %v1993_v10, %v1015_v50 }
 0x11e   : > { %1938 = vrot.lane.b32.xlu0 %v1906_v42, %s3775_s24  ;;  %v1289_v37 = vpop.permute.xlu1 %1288  ;;  %s4954_s24 = scalar_lea.hbm %s5080_s2, %s3251_s10 }
 0x11f   : > { %v2061_v25 = vsel %vm2041_vm6, %v2028_v8, %v1289_v37 }
 0x120   : > { %v1287_v32 = vpop.permute.xlu0 %1286 }
 0x121   : > { %v2059_v31 = vsel %vm2041_vm6, %v2026_v61, %v1287_v32 }
 0x122   : > { %v1417_v59 = vpop.permute.xlu1 %1416 }
 0x123   : > { %v2094_v9 = vsel %vm2074_vm7, %v2061_v25, %v1417_v59 }
 0x124   : > { %v1415_v36 = vpop.permute.xlu0 %1414 }
 0x125   : > { %v2092_v62 = vsel %vm2074_vm7, %v2059_v31, %v1415_v36 }
 0x126   : > { %v1529_v47 = vpop.permute.xlu1 %1528 }
 0x127   : > { %v2127_v22 = vsel %vm2107_vm8, %v2094_v9, %v1529_v47 }
 0x128   : > { %v1527_v44 = vpop.permute.xlu0 %1526 }
 0x129   : > { %v2125_v18 = vsel %vm2107_vm8, %v2092_v62, %v1527_v44 }
 0x12a   : > { %v1801_v55 = vpop.permute.xlu1 %1800 }
 0x12b   : > { %v2160_v56 = vsel %vm2140_vm9, %v2127_v22, %v1801_v55 }
 0x12c   : > { %v1799_v49 = vpop.permute.xlu0 %1798 }
 0x12d   : > { %v2158_v41 = vsel %vm2140_vm9, %v2125_v18, %v1799_v49 }
 0x12e   : > { %v778_v2 = vpop.permute.xlu1 %777 }
 0x12f   : > { %v1964_v26 = vsel %vm1942_vm3, %v4355_v19, %v778_v2 }
 0x130   : > { %v1927_v58 = vpop.permute.xlu0 %1926 }
 0x131   : > { %v2191_v33 = vsel %vm2173_vm10, %v2158_v41, %v1927_v58 }
 0x132   : > { %3388 = vmatprep.mubr.msk.bf16.mxu1 %vm2226_vm11, %v2191_v33  ;;  %v780_v3 = vpop.permute.xlu1 %779 }
 0x133   : > { %v1966_v5 = vsel %vm1942_vm3, %v4380_v38, %v780_v3 }
 0x134   : > { %v1929_v28 = vpop.permute.xlu0 %1928 }
 0x135   : > { %v2193_v53 = vsel %vm2173_vm10, %v2160_v56, %v1929_v28 }
 0x136   : > { %3389 = vmatmul.mubr.msk.bf16.vlgmr.msra.gmra.mxu1 %vm2226_vm11, %v2193_v53  ;;  %v909_v30 = vpop.permute.xlu1 %908 }
 0x137   : > { %v1999_v51 = vsel %vm1975_vm4, %v1966_v5, %v909_v30 }
 0x138   : > { %v907_v35 = vpop.permute.xlu0 %906 }
 0x139   : > { %v1997_v13 = vsel %vm1975_vm4, %v1964_v26, %v907_v35 }
 0x13a   : > { %v1021_v12 = vpop.permute.xlu1 %1020 }
 0x13b   : > { %v2032_v19 = vsel %vm2008_vm5, %v1999_v51, %v1021_v12 }
 0x13c   : > { %v1019_v7 = vpop.permute.xlu0 %1018 }
 0x13d   : > { %v2030_v6 = vsel %vm2008_vm5, %v1997_v13, %v1019_v7 }
 0x13e   : > { %v1293_v63 = vpop.permute.xlu1 %1292 }
 0x13f   : > { %v2065_v11 = vsel %vm2041_vm6, %v2032_v19, %v1293_v63 }
 0x140   : > { %v1291_v40 = vpop.permute.xlu0 %1290 }
 0x141   : > { %v2063_v39 = vsel %vm2041_vm6, %v2030_v6, %v1291_v40 }
 0x142   : > { %v1421_v57 = vpop.permute.xlu1 %1420 }
 0x143   : > { %v2098_v43 = vsel %vm2074_vm7, %v2065_v11, %v1421_v57 }
 0x144   : > { %v1419_v45 = vpop.permute.xlu0 %1418 }
 0x145   : > { %v2096_v1 = vsel %vm2074_vm7, %v2063_v39, %v1419_v45 }
 0x146   : > { %v1533_v54 = vpop.permute.xlu1 %1532 }
 0x147   : > { %v2131_v38 = vsel %vm2107_vm8, %v2098_v43, %v1533_v54 }
 0x148   : > { %v1531_v24 = vpop.permute.xlu0 %1530 }
 0x149   : > { %v2129_v4 = vsel %vm2107_vm8, %v2096_v1, %v1531_v24 }
 0x14a   : > { %v1805_v14 = vpop.permute.xlu1 %1804 }
 0x14b   : > { %v2164_v16 = vsel %vm2140_vm9, %v2131_v38, %v1805_v14 }
 0x14c   : > { %v1803_v29 = vpop.permute.xlu0 %1802 }
 0x14d   : > { %v2162_v60 = vsel %vm2140_vm9, %v2129_v4, %v1803_v29 }
 0x14e   : > { %v782_v46 = vpop.permute.xlu1 %781 }
 0x14f   : > { %v1968_v49 = vsel %vm1942_vm3, %v4500_v52, %v782_v46 }
 0x150   : > { %v1931_v34 = vpop.permute.xlu0 %1930 }
 0x151   : > { %v2195_v27 = vsel %vm2173_vm10, %v2162_v60, %v1931_v34 }
 0x152   : > { %3392 = vmatprep.mubr.msk.bf16.mxu1 %vm2226_vm11, %v2195_v27  ;;  %v784_v17 = vpop.permute.xlu1 %783 }
 0x153   : > { %v1970_v2 = vsel %vm1942_vm3, %v4530_v0, %v784_v17 }
 0x154   : > { %v1933_v42 = vpop.permute.xlu0 %1932 }
 0x155   : > { %v2197_v50 = vsel %vm2173_vm10, %v2164_v16, %v1933_v42 }
 0x156   : > { %3393 = vmatmul.mubr.msk.bf16.gmra.mxu1 %vm2226_vm11, %v2197_v50  ;;  %v913_v37 = vpop.permute.xlu1 %912 }
 0x157   : > { %v2003_v41 = vsel %vm1975_vm4, %v1970_v2, %v913_v37 }
 0x158   : > { %v911_v32 = vpop.permute.xlu0 %910 }
 0x159   : > { %v2001_v31 = vsel %vm1975_vm4, %v1968_v49, %v911_v32 }
 0x15a   : > { %v1025_v59 = vpop.permute.xlu1 %1024 }
 0x15b   : > { %v2036_v52 = vsel %vm2008_vm5, %v2003_v41, %v1025_v59 }
 0x15c   : > { %v1023_v36 = vpop.permute.xlu0 %1022 }
 0x15d   : > { %v2034_v62 = vsel %vm2008_vm5, %v2001_v31, %v1023_v36 }
 0x15e   : > { %v1297_v47 = vpop.permute.xlu1 %1296 }
 0x15f   : > { %v2069_v22 = vsel %vm2041_vm6, %v2036_v52, %v1297_v47 }
 0x160   : > { %v1295_v44 = vpop.permute.xlu0 %1294 }
 0x161   : > { %v2067_v18 = vsel %vm2041_vm6, %v2034_v62, %v1295_v44 }
 0x162   : > { %v1425_v23 = vpop.permute.xlu1 %1424 }
 0x163   : > { %v2102_v56 = vsel %vm2074_vm7, %v2069_v22, %v1425_v23 }
 0x164   : > { %v1423_v10 = vpop.permute.xlu0 %1422 }
 0x165   : > { %v2100_v8 = vsel %vm2074_vm7, %v2067_v18, %v1423_v10 }
 0x166   : > { %v1537_v55 = vpop.permute.xlu1 %1536 }
 0x167   : > { %v2135_v0 = vsel %vm2107_vm8, %v2102_v56, %v1537_v55 }
 0x168   : > { %v1535_v61 = vpop.permute.xlu0 %1534 }
 0x169   : > { %v2133_v58 = vsel %vm2107_vm8, %v2100_v8, %v1535_v61 }
 0x16a   : > { %v1809_v21 = vpop.permute.xlu1 %1808 }
 0x16b   : > { %v2168_v53 = vsel %vm2140_vm9, %v2135_v0, %v1809_v21 }
 0x16c   : > { %v1807_v48 = vpop.permute.xlu0 %1806 }
 0x16d   : > { %v2166_v33 = vsel %vm2140_vm9, %v2133_v58, %v1807_v48 }
 0x16e   : > { %v786_v25 = vpop.permute.xlu1 %785 }
 0x16f   : > { %v1972_v16 = vsel %vm1942_vm3, %v4661_v20, %v786_v25 }
 0x170   : > { %v1935_v9 = vpop.permute.xlu0 %1934 }
 0x171   : > { %v2199_v3 = vsel %vm2173_vm10, %v2166_v33, %v1935_v9 }
 0x172   : > { %3396 = vmatprep.mubr.msk.bf16.mxu1 %vm2226_vm11, %v2199_v3  ;;  %v788_v28 = vpop.permute.xlu1 %787 }
 0x173   : > { %v1974_v17 = vsel %vm1942_vm3, %v4691_v15, %v788_v28 }
 0x174   : > { %v1937_v30 = vpop.permute.xlu0 %1936 }
 0x175   : > { %v2201_v35 = vsel %vm2173_vm10, %v2168_v53, %v1937_v30 }
 0x176   : > { %v3374_v12 = vpop.f32.mrf.mxu0  ;;  %3397 = vmatmul.mubr.msk.bf16.gmra.mxu1 %vm2226_vm11, %v2201_v35  ;;  %v917_v7 = vpop.permute.xlu1 %916 }
 0x177   : > { %v2624_v39 = vmul.f32 %v3374_v12, %v3374_v12  ;;  %v2007_v42 = vsel %vm1975_vm4, %v1974_v17, %v917_v7 }
 0x178   : > { %v2297_v63 = vpop.f32.mrf.mxu0  ;;  %v915_v40 = vpop.permute.xlu0 %914 }
 0x179   : > { %v2622_v13 = vmul.f32 %v2297_v63, %v2297_v63  ;;  %v2005_v50 = vsel %vm1975_vm4, %v1972_v16, %v915_v40 }
 0x17a   : > { %v3375_v57 = vpop.f32.mrf.mxu0  ;;  %v1029_v54 = vpop.permute.xlu1 %1028 }
 0x17b   : > { %v3260_v45 = vpack.c.bf16 %v3375_v57, %v3374_v12  ;;  %v2625_v46 = vmul.f32 %v3375_v57, %v3375_v57  ;;  %v2040_v37 = vsel %vm2008_vm5, %v2007_v42, %v1029_v54 }
 0x17c   : > { %v2300_v24 = vpop.f32.mrf.mxu0  ;;  %v1027_v26 = vpop.permute.xlu0 %1026 }
 0x17d   : > { %3332 = vst [vmem:[%s4913_s9 + $0x8] sm:$0xff] %v3260_v45   ;;  %v3255_v14 = vpack.c.bf16 %v2300_v24, %v2297_v63  ;;  %v2584_v6 = vadd.f32 %v2300_v24, %v2297_v63  ;;  %v2623_v29 = vmul.f32 %v2300_v24, %v2300_v24  ;;  %v2038_v59 = vsel %vm2008_vm5, %v2005_v50, %v1027_v26 }
 0x17e   : > { %v1301_v51 = vpop.permute.xlu1 %1300 }
 0x17f   : > { %3256 = vst [vmem:[%s4913_s9] sm:$0xff] %v3255_v14   ;;  %v2585_v5 = vadd.f32 %v3374_v12, %v2584_v6  ;;  %v2654_v1 = vadd.f32 %v2623_v29, %v2622_v13  ;;  %v2073_v36 = vsel %vm2041_vm6, %v2040_v37, %v1301_v51 }
 0x180   : > { %v1299_v4 = vpop.permute.xlu0 %1298 }
 0x181   : > { %v2655_v19 = vadd.f32 %v2654_v1, %v2624_v39  ;;  %v2586_v60 = vadd.f32 %v3375_v57, %v2585_v5  ;;  %v2071_v44 = vsel %vm2041_vm6, %v2038_v59, %v1299_v4 }
 0x182   : > { %v1429_v34 = vpop.permute.xlu1 %1428 }
 0x183   : > { %v2656_v11 = vadd.f32 %v2655_v19, %v2625_v46  ;;  %v2106_v23 = vsel %vm2074_vm7, %v2073_v36, %v1429_v34 }
 0x184   : > { %v1427_v27 = vpop.permute.xlu0 %1426 }
 0x185   : > { %v2104_v15 = vsel %vm2074_vm7, %v2071_v44, %v1427_v27 }
 0x186   : > { %v1541_v43 = vpop.permute.xlu1 %1540 }
 0x187   : > { %v2139_v20 = vsel %vm2107_vm8, %v2106_v23, %v1541_v43 }
 0x188   : > { %v1539_v38 = vpop.permute.xlu0 %1538 }
 0x189   : > { %v2137_v10 = vsel %vm2107_vm8, %v2104_v15, %v1539_v38 }
 0x18a   : > { %v1813_v32 = vpop.permute.xlu1 %1812 }
 0x18b   : > { %v2172_v55 = vsel %vm2140_vm9, %v2139_v20, %v1813_v32 }
 0x18c   : > { %v1811_v47 = vpop.permute.xlu0 %1810 }
 0x18d   : > { %v2170_v49 = vsel %vm2140_vm9, %v2137_v10, %v1811_v47 }
 0x18e   : > { %v1941_v61 = vpop.permute.xlu1 %1940 }
 0x18f   : > { %v2205_v31 = vsel %vm2173_vm10, %v2172_v55, %v1941_v61 }
 0x190   : > { %v1939_v21 = vpop.permute.xlu0 %1938 }
 0x191   : > { %v2203_v62 = vsel %vm2173_vm10, %v2170_v49, %v1939_v21 }
 0x192   : > { %3400 = vmatprep.mubr.msk.bf16.mxu1 %vm2226_vm11, %v2203_v62 }
 0x193   : > { %3401 = vmatmul.mubr.msk.bf16.gmra.mxu1 %vm2226_vm11, %v2205_v31 }
 0x196   : > { %v3378_v48 = vpop.f32.mrf.mxu0 }
 0x197   : > { %v2628_v3 = vmul.f32 %v3378_v48, %v3378_v48 }
 0x198   : > { %v2313_v18 = vpop.f32.mrf.mxu0 }
 0x199   : > { %v2587_v2 = vadd.f32 %v2586_v60, %v2313_v18  ;;  %v2626_v8 = vmul.f32 %v2313_v18, %v2313_v18 }
 0x19a   : > { %v3379_v41 = vpop.f32.mrf.mxu0 }
 0x19b   : > { %v2657_v58 = vadd.f32 %v2656_v11, %v2626_v8  ;;  %v3270_v25 = vpack.c.bf16 %v3379_v41, %v3378_v48  ;;  %v2629_v28 = vmul.f32 %v3379_v41, %v3379_v41 }
 0x19c   : > { %v2316_v52 = vpop.f32.mrf.mxu0 }
 0x19d   : > { %3334 = vst [vmem:[%s4913_s9 + $0x18] sm:$0xff] %v3270_v25   ;;  %v3265_v33 = vpack.c.bf16 %v2316_v52, %v2313_v18  ;;  %v2588_v9 = vadd.f32 %v2587_v2, %v2316_v52  ;;  %v2627_v22 = vmul.f32 %v2316_v52, %v2316_v52 }
 0x19f   : > { %3333 = vst [vmem:[%s4913_s9 + $0x10] sm:$0xff] %v3265_v33   ;;  %v2589_v56 = vadd.f32 %v3378_v48, %v2588_v9  ;;  %v2658_v0 = vadd.f32 %v2657_v58, %v2627_v22 }
 0x1a1   : > { %v2659_v53 = vadd.f32 %v2658_v0, %v2628_v3  ;;  %v2590_v30 = vadd.f32 %v3379_v41, %v2589_v56 }
 0x1a3   : > { %v2660_v35 = vadd.f32 %v2659_v53, %v2629_v28 }
 0x1b6   : > { %v3382_v12 = vpop.f32.mrf.mxu0 }
 0x1b7   : > { %v2632_v6 = vmul.f32 %v3382_v12, %v3382_v12 }
 0x1b8   : > { %v2329_v7 = vpop.f32.mrf.mxu0 }
 0x1b9   : > { %v2591_v63 = vadd.f32 %v2590_v30, %v2329_v7  ;;  %v2630_v40 = vmul.f32 %v2329_v7, %v2329_v7 }
 0x1ba   : > { %v3383_v57 = vpop.f32.mrf.mxu0 }
 0x1bb   : > { %v2661_v45 = vadd.f32 %v2660_v35, %v2630_v40  ;;  %v3280_v54 = vpack.c.bf16 %v3383_v57, %v3382_v12  ;;  %v2633_v5 = vmul.f32 %v3383_v57, %v3383_v57 }
 0x1bc   : > { %v2332_v24 = vpop.f32.mrf.mxu0 }
 0x1bd   : > { %3336 = vst [vmem:[%s4913_s9 + $0x28] sm:$0xff] %v3280_v54   ;;  %v3275_v26 = vpack.c.bf16 %v2332_v24, %v2329_v7  ;;  %v2592_v13 = vadd.f32 %v2591_v63, %v2332_v24  ;;  %v2631_v14 = vmul.f32 %v2332_v24, %v2332_v24 }
 0x1bf   : > { %3335 = vst [vmem:[%s4913_s9 + $0x20] sm:$0xff] %v3275_v26   ;;  %v2593_v29 = vadd.f32 %v3382_v12, %v2592_v13  ;;  %v2662_v39 = vadd.f32 %v2661_v45, %v2631_v14 }
 0x1c1   : > { %v2663_v1 = vadd.f32 %v2662_v39, %v2632_v6  ;;  %v2594_v51 = vadd.f32 %v3383_v57, %v2593_v29 }
 0x1c3   : > { %v2664_v4 = vadd.f32 %v2663_v1, %v2633_v5 }
 0x1d6   : > { %v3386_v46 = vpop.f32.mrf.mxu0 }
 0x1d7   : > { %v2636_v50 = vmul.f32 %v3386_v46, %v3386_v46 }
 0x1d8   : > { %v2345_v19 = vpop.f32.mrf.mxu0 }
 0x1d9   : > { %v2595_v60 = vadd.f32 %v2594_v51, %v2345_v19  ;;  %v2634_v34 = vmul.f32 %v2345_v19, %v2345_v19 }
 0x1da   : > { %v3387_v11 = vpop.f32.mrf.mxu0 }
 0x1db   : > { %v2665_v27 = vadd.f32 %v2664_v4, %v2634_v34  ;;  %v3290_v43 = vpack.c.bf16 %v3387_v11, %v3386_v46  ;;  %v2637_v59 = vmul.f32 %v3387_v11, %v3387_v11 }
 0x1dc   : > { %v2348_v38 = vpop.f32.mrf.mxu0 }
 0x1dd   : > { %3338 = vst [vmem:[%s4913_s9 + $0x38] sm:$0xff] %v3290_v43   ;;  %v3285_v17 = vpack.c.bf16 %v2348_v38, %v2345_v19  ;;  %v2596_v16 = vadd.f32 %v2595_v60, %v2348_v38  ;;  %v2635_v42 = vmul.f32 %v2348_v38, %v2348_v38 }
 0x1df   : > { %3337 = vst [vmem:[%s4913_s9 + $0x30] sm:$0xff] %v3285_v17   ;;  %v2597_v37 = vadd.f32 %v3386_v46, %v2596_v16  ;;  %v2666_v32 = vadd.f32 %v2665_v27, %v2635_v42 }
 0x1e1   : > { %v2667_v36 = vadd.f32 %v2666_v32, %v2636_v50  ;;  %v2598_v47 = vadd.f32 %v3387_v11, %v2597_v37 }
 0x1e3   : > { %v2668_v44 = vadd.f32 %v2667_v36, %v2637_v59 }
 0x1f6   : > { %v3390_v23 = vpop.f32.mrf.mxu1 }
 0x1f7   : > { %v2640_v18 = vmul.f32 %v3390_v23, %v3390_v23 }
 0x1f8   : > { %v2361_v15 = vpop.f32.mrf.mxu1 }
 0x1f9   : > { %v2599_v20 = vadd.f32 %v2598_v47, %v2361_v15  ;;  %v2638_v10 = vmul.f32 %v2361_v15, %v2361_v15 }
 0x1fa   : > { %v3391_v55 = vpop.f32.mrf.mxu1 }
 0x1fb   : > { %v2669_v61 = vadd.f32 %v2668_v44, %v2638_v10  ;;  %v3300_v49 = vpack.c.bf16 %v3391_v55, %v3390_v23  ;;  %v2641_v41 = vmul.f32 %v3391_v55, %v3391_v55 }
 0x1fc   : > { %v2364_v31 = vpop.f32.mrf.mxu1 }
 0x1fd   : > { %3340 = vst [vmem:[%s4913_s9 + $0x48] sm:$0xff] %v3300_v49   ;;  %v3295_v21 = vpack.c.bf16 %v2364_v31, %v2361_v15  ;;  %v2600_v62 = vadd.f32 %v2599_v20, %v2364_v31  ;;  %v2639_v48 = vmul.f32 %v2364_v31, %v2364_v31 }
 0x1ff   : > { %3339 = vst [vmem:[%s4913_s9 + $0x40] sm:$0xff] %v3295_v21   ;;  %v2601_v2 = vadd.f32 %v3390_v23, %v2600_v62  ;;  %v2670_v8 = vadd.f32 %v2669_v61, %v2639_v48 }
 0x201   : > { %v2671_v58 = vadd.f32 %v2670_v8, %v2640_v18  ;;  %v2602_v25 = vadd.f32 %v3391_v55, %v2601_v2 }
 0x203   : > { %v2672_v52 = vadd.f32 %v2671_v58, %v2641_v41 }
 0x216   : > { %v3394_v33 = vpop.f32.mrf.mxu1 }
 0x217   : > { %v2644_v26 = vmul.f32 %v3394_v33, %v3394_v33 }
 0x218   : > { %v2377_v9 = vpop.f32.mrf.mxu1 }
 0x219   : > { %v2642_v63 = vmul.f32 %v2377_v9, %v2377_v9  ;;  %v2603_v40 = vadd.f32 %v2602_v25, %v2377_v9 }
 0x21a   : > { %v3395_v22 = vpop.f32.mrf.mxu1 }
 0x21b   : > { %v3310_v3 = vpack.c.bf16 %v3395_v22, %v3394_v33  ;;  %v2673_v45 = vadd.f32 %v2672_v52, %v2642_v63  ;;  %v2645_v6 = vmul.f32 %v3395_v22, %v3395_v22 }
 0x21c   : > { %v2380_v56 = vpop.f32.mrf.mxu1 }
 0x21d   : > { %3342 = vst [vmem:[%s4913_s9 + $0x58] sm:$0xff] %v3310_v3   ;;  %v3305_v0 = vpack.c.bf16 %v2380_v56, %v2377_v9  ;;  %v2643_v57 = vmul.f32 %v2380_v56, %v2380_v56  ;;  %v2604_v54 = vadd.f32 %v2603_v40, %v2380_v56 }
 0x21f   : > { %3341 = vst [vmem:[%s4913_s9 + $0x50] sm:$0xff] %v3305_v0   ;;  %v2674_v24 = vadd.f32 %v2673_v45, %v2643_v57  ;;  %v2605_v13 = vadd.f32 %v3394_v33, %v2604_v54 }
 0x221   : > { %v2675_v14 = vadd.f32 %v2674_v24, %v2644_v26  ;;  %v2606_v29 = vadd.f32 %v3395_v22, %v2605_v13 }
 0x223   : > { %v2676_v1 = vadd.f32 %v2675_v14, %v2645_v6 }
 0x236   : > { %v3398_v28 = vpop.f32.mrf.mxu1 }
 0x237   : > { %v2648_v60 = vmul.f32 %v3398_v28, %v3398_v28 }
 0x238   : > { %v2393_v53 = vpop.f32.mrf.mxu1 }
 0x239   : > { %v2646_v39 = vmul.f32 %v2393_v53, %v2393_v53  ;;  %v2607_v5 = vadd.f32 %v2606_v29, %v2393_v53 }
 0x23a   : > { %v3399_v30 = vpop.f32.mrf.mxu1 }
 0x23b   : > { %v3320_v35 = vpack.c.bf16 %v3399_v30, %v3398_v28  ;;  %v2677_v4 = vadd.f32 %v2676_v1, %v2646_v39  ;;  %v2649_v38 = vmul.f32 %v3399_v30, %v3399_v30 }
 0x23c   : > { %v2396_v12 = vpop.f32.mrf.mxu1 }
 0x23d   : > { %3344 = vst [vmem:[%s4913_s9 + $0x68] sm:$0xff] %v3320_v35   ;;  %v3315_v7 = vpack.c.bf16 %v2396_v12, %v2393_v53  ;;  %v2647_v51 = vmul.f32 %v2396_v12, %v2396_v12  ;;  %v2608_v46 = vadd.f32 %v2607_v5, %v2396_v12 }
 0x23f   : > { %3343 = vst [vmem:[%s4913_s9 + $0x60] sm:$0xff] %v3315_v7   ;;  %v2678_v19 = vadd.f32 %v2677_v4, %v2647_v51  ;;  %v2609_v34 = vadd.f32 %v3398_v28, %v2608_v46 }
 0x241   : > { %v2679_v27 = vadd.f32 %v2678_v19, %v2648_v60  ;;  %v2610_v17 = vadd.f32 %v3399_v30, %v2609_v34 }
 0x243   : > { %v2680_v37 = vadd.f32 %v2679_v27, %v2649_v38 }
 0x253   : > { %v3402_v11 = vpop.f32.mrf.mxu1 }
 0x254   : > { %v2652_v15 = vmul.f32 %v3402_v11, %v3402_v11 }
 0x255   : > { %v2409_v43 = vpop.f32.mrf.mxu1 }
 0x256   : > { %v2650_v16 = vmul.f32 %v2409_v43, %v2409_v43  ;;  %v2611_v50 = vadd.f32 %v2610_v17, %v2409_v43 }
 0x257   : > { %v3403_v42 = vpop.f32.mrf.mxu1 }
 0x258   : > { %v3330_v32 = vpack.c.bf16 %v3403_v42, %v3402_v11  ;;  %v2681_v36 = vadd.f32 %v2680_v37, %v2650_v16 }
 0x259   : > { %v2412_v59 = vpop.f32.mrf.mxu1 }
 0x25a   : > { %3346 = vst [vmem:[%s4913_s9 + $0x78] sm:$0xff] %v3330_v32   ;;  %v3325_v47 = vpack.c.bf16 %v2412_v59, %v2409_v43  ;;  %v2612_v44 = vadd.f32 %v2611_v50, %v2412_v59  ;;  %v2651_v23 = vmul.f32 %v2412_v59, %v2412_v59 }
 0x25c   : > { %3345 = vst [vmem:[%s4913_s9 + $0x70] sm:$0xff] %v3325_v47   ;;  %v2613_v20 = vadd.f32 %v3402_v11, %v2612_v44  ;;  %v2682_v10 = vadd.f32 %v2681_v36, %v2651_v23 }
 0x25d   : > { %3647 = shalt.err (!%p3644_p5)
}
 0x25e   : > { %s3648_s8 = scalar_lea.hbm %s4954_s24, 2048  ;;  %s3652_s13 = scalar_lea.hbm %s5080_s2, 4096 }
 0x25f   : > { %p3649_p6 = scmp.ne.s32.totalorder %s4954_s24, %s3648_s8  ;;  %p3653_p10 = scmp.lt.s32.totalorder %s4954_s24, %s5080_s2 }
 0x260   : > { %p3654_p11 = scmp.lt.s32.totalorder %s3652_s13, %s3648_s8 }
 0x261   : > { %p3650_p7 = pnand %p3649_p6, %p3847_p4 }
 0x262   : > { %p3655_p12 = por %p3654_p11, %p3653_p10 }
 0x263   : > { %p3651_p9 = pneg %p3650_p7 }
 0x265   : > { %p3656_p13 = pnand %p3655_p12, %p3651_p9 }
 0x267   : > { %3659 = shalt.err (!%p3656_p13)
}
 0x268   : > { %s3777_s30 = smov 64   ;;  %v2653_v55 = vmul.f32 %v3403_v42, %v3403_v42  ;;  %v2614_v61 = vadd.f32 %v3403_v42, %v2613_v20  ;;  %v2683_v49 = vadd.f32 %v2682_v10, %v2652_v15  ;;  %s4986_s6 = sand.u32 1, %s2882_s21  }
 0x269   : > { %3413 = dma.vmem_to_hbm [thread:$0]  (%p3847_p4), %s4957_s12, 2048, %s4954_s24, %s2693_s29, %s3777_s30, %s3777_s30, %s3771_s11  }
 0x26a   : > { %v2615_v31 = vrot.slane %v2614_v61, 4  ;;  %v2684_v21 = vadd.f32 %v2683_v49, %v2653_v55  ;;  %s3215_s26 = sshll.u32 %s3758_s18, 4  ;;  %s218_s8 = scalar_lea.vmem [#allocation4], %s4908_s7 }
 0x26b   : > { %s2733_s11 = sshll.u32 %s218_s8, 4  ;;  %s224_s12 = scalar_lea.vmem [#allocation6], %s4908_s7  ;;  %s4998_s11 = int_to_ptr.vmem [resolvable:$true] %s2733_s11 }
 0x26c   : > { %v2616_v62 = vadd.f32 %v2615_v31, %v2614_v61  ;;  %v2685_v48 = vrot.slane %v2684_v21, 4  ;;  %s2747_s24 = sshll.u32 %s224_s12, 4  ;;  %s4996_s10 = scalar_lea.hbm %s5081_s3, %s3215_s26  ;;  %s5005_s24 = int_to_ptr.vmem [resolvable:$true] %s2747_s24 }
 0x26d   : > { %s5003_s13 = scalar_lea.hbm %s5082_s4, %s3215_s26  ;;  %s2698_s14 = scalar_lea.sflag [#allocation5], %s4986_s6 }
 0x26e   : > { %v2686_v18 = vadd.f32 %v2685_v48, %v2684_v21  ;;  %v2617_v2 = vrot.slane %v2616_v62, 2  ;;  %s3660_s5 = scalar_lea.vmem %s4998_s11, 16  ;;  %s3778_s30 = smov [#allocation4]  }
 0x26f   : > { %p3661_p0 = scmp.ne.s32.totalorder %s4998_s11, %s3660_s5  ;;  %s3664_s29 = sshll.u32 %s3778_s30, 4  ;;  %s3665_s29 = int_to_ptr.vmem [resolvable:$false] %s3664_s29 }
 0x270   : > { %v2618_v8 = vadd.f32 %v2617_v2, %v2616_v62  ;;  %v2687_v41 = vrot.slane %v2686_v18, 2  ;;  %s3666_s9 = scalar_lea.vmem %s3665_s29, 32  ;;  %p3667_p3 = scmp.lt.s32.totalorder %s4998_s11, %s3665_s29 }
 0x271   : > { %p3662_p1 = pnand %p3661_p0, %p3847_p4  ;;  %p3668_p5 = scmp.lt.s32.totalorder %s3666_s9, %s3660_s5 }
 0x272   : > { %v2619_v58 = vrot.slane %v2618_v8, 1  ;;  %v2688_v25 = vadd.f32 %v2687_v41, %v2686_v18 }
 0x273   : > { %p3663_p2 = pneg %p3662_p1  ;;  %p3669_p6 = por %p3668_p5, %p3667_p3 }
 0x274   : > { %v2620_v52 = vadd.f32 %v2619_v58, %v2618_v8  ;;  %v2689_v33 = vrot.slane %v2688_v25, 1 }
 0x275   : > { %p3670_p7 = pnand %p3669_p6, %p3663_p2 }
 0x276   : > { %2621 = vst [vmem:[%s218_s8] sm:$0x1] %v2620_v52  ;;  %v2690_v9 = vadd.f32 %v2689_v33, %v2688_v25 }
 0x277   : > { %3673 = shalt.err (!%p3670_p7)
}
 0x278   : > { %s3674_s26 = scalar_lea.hbm %s4996_s10, 16  ;;  %s3678_s21 = scalar_lea.hbm %s5081_s3, 32 }
 0x279   : > { %p3675_p9 = scmp.ne.s32.totalorder %s4996_s10, %s3674_s26  ;;  %p3679_p12 = scmp.lt.s32.totalorder %s4996_s10, %s5081_s3 }
 0x27a   : > { %p3680_p13 = scmp.lt.s32.totalorder %s3678_s21, %s3674_s26 }
 0x27b   : > { %p3676_p10 = pnand %p3675_p9, %p3847_p4 }
 0x27c   : > { %p3681_p0 = por %p3680_p13, %p3679_p12 }
 0x27d   : > { %p3677_p11 = pneg %p3676_p10 }
 0x27f   : > { %p3682_p1 = pnand %p3681_p0, %p3677_p11 }
 0x281   : > { %3685 = shalt.err (!%p3682_p1)
}
 0x282   : > { %3414 = dma.vmem_to_hbm [thread:$0]  (%p3847_p4), %s4998_s11, 16, %s4996_s10, %s2698_s14   ;;  %2691 = vst [vmem:[%s224_s12] sm:$0x1] %v2690_v9 }
 0x283   : > { %s3686_s22 = scalar_lea.vmem %s5005_s24, 16  ;;  %s3779_s5 = smov [#allocation6]  }
 0x284   : > { %p3687_p2 = scmp.ne.s32.totalorder %s5005_s24, %s3686_s22  ;;  %s3690_s29 = sshll.u32 %s3779_s5, 4  ;;  %s3691_s29 = int_to_ptr.vmem [resolvable:$false] %s3690_s29 }
 0x285   : > { %s3692_s9 = scalar_lea.vmem %s3691_s29, 32  ;;  %p3693_p6 = scmp.lt.s32.totalorder %s5005_s24, %s3691_s29 }
 0x286   : > { %p3688_p3 = pnand %p3687_p2, %p3847_p4  ;;  %p3694_p7 = scmp.lt.s32.totalorder %s3692_s9, %s3686_s22 }
 0x288   : > { %p3689_p5 = pneg %p3688_p3  ;;  %p3695_p9 = por %p3694_p7, %p3693_p6 }
 0x28a   : > { %p3696_p10 = pnand %p3695_p9, %p3689_p5 }
 0x28c   : > { %3699 = shalt.err (!%p3696_p10)
}
 0x28d   : > { %s3700_s7 = scalar_lea.hbm %s5003_s13, 16  ;;  %s3704_s10 = scalar_lea.hbm %s5082_s4, 32 }
 0x28e   : > { %p3701_p11 = scmp.ne.s32.totalorder %s5003_s13, %s3700_s7  ;;  %p3705_p0 = scmp.lt.s32.totalorder %s5003_s13, %s5082_s4 }
 0x28f   : > { %p3706_p1 = scmp.lt.s32.totalorder %s3704_s10, %s3700_s7 }
 0x290   : > { %p3702_p12 = pnand %p3701_p11, %p3847_p4 }
 0x291   : > { %p3707_p2 = por %p3706_p1, %p3705_p0 }
 0x292   : > { %p3703_p13 = pneg %p3702_p12 }
 0x294   : > { %p3708_p3 = pnand %p3707_p2, %p3703_p13 }
 0x296   : > { %3711 = shalt.err (!%p3708_p3)
}
 0x297   : > { %3415 = dma.vmem_to_hbm [thread:$0]  (%p3847_p4), %s5005_s24, 16, %s5003_s13, %s2698_s14  }
 0x298 PF: > { %p3429_p5 = scmp.ge.s32.totalorder %s3766_s20, 2  ;;  %s2759_s18 = sand.u32 1, %s3746_s15  }
 0x299   : > { %s2760_s21 = scalar_lea.sflag [#allocation3], %s2759_s18 }
 0x29a   : > { %p3420_p6 = pnand %p3429_p5, %p3856_p8 }
 0x29c   : > { %p3421_p7 = pneg %p3420_p6 }
 0x29e   : > { %3737 = dma.done.wait (%p3421_p7), %s2760_s21, 2048  }
 0x29f   : > { %3739 = vsyncadd (%p3421_p7), %s2760_s21, 4294965248  ;;  %s5086_s30 = sadd.s32 4294967294, %s3766_s20  }
 0x2a0   : > { %s2768_s25 = sand.u32 1, %s5086_s30  }
 0x2a1   : > { %s2769_s22 = scalar_lea.sflag [#allocation5], %s2768_s25 }
 0x2a2   : > { %3741 = dma.done.wait (%p3421_p7), %s2769_s22, 32  }
 0x2a3   : > { %3743 = vsyncadd (%p3421_p7), %s2769_s22, 4294967264  ;;  %s21_s20 = sadd.s32 1, %s3766_s20   ;;  %s5087_s15 = smov %s3750_s16 }
 0x2a4   : > { %p18_p4 = scmp.ge.s32.totalorder %s21_s20, 4   ;;  %s5088_s16 = smov %s3754_s17 }
 0x2a5   : > { %s5089_s17 = smov %s3862_s28  ;;  %s5090_s18 = smov %s3762_s19 }
 0x2a6   : > { %s5091_s19 = smov %s5093_s23  ;;  %20 = sbr.rel (!%p18_p4) target bundleno = 6 (0x6), region = 98 }
 0x2ab   :  { %2781 = vsyncpa [#allocation3], 1 }
 0x2ac   :  { %2783 = vsyncpa [#allocation3 + $0x1], 1 }
 0x2ad   :  { %2784 = vsyncpa [#allocation5], 1 }
 0x2ae   :  { %2786 = vsyncpa [#allocation5 + $0x1], 1 }

</bundles_post_ra>
